<compile_context>
chip_gen: v5e
topology: v5e:2x2
jax: 0.10.0
libtpu: 0.0.40
codegen_flags: <defaults>
</compile_context>

<pallas_src>
import functools

import jax
import jax.numpy as jnp
from jax import lax
from jax.experimental import pallas as pl
from jax.experimental.pallas import tpu as pltpu


# ------------------------------------------------------------------
# Pallas kernel: one (batch, row-block) output tile.
# ------------------------------------------------------------------
def _make_conv_kernel(taps, cin_p, R, Ws, Wout, L):
    """taps: tuple of (channel_offset, lane_offset); everything is static."""

    def kernel(x_ref, w_ref, b_ref, o_ref, rhs_ref):
        # x_ref  : (Cp, Rh*Ws)     bf16  input window (R rows + halo, lane-flat)
        # w_ref  : (Cout, K)       bf16  folded conv weights, K = n_taps * cin_p
        # b_ref  : (Cout, 1)       f32
        # o_ref  : (Cout, R, Wout) f32   NCHW output tile
        # rhs_ref: (K, L)          bf16  VMEM scratch, L = R * Ws
        #
        # 1) Assemble the RHS: one lane-shifted slab per conv tap, stacked along
        #    the MXU contraction axis (static sublane/lane slices only).
        for t, (co, lo) in enumerate(taps):
            rhs_ref[t * cin_p:(t + 1) * cin_p, :] = x_ref[co:co + cin_p, lo:lo + L]

        # 2) Single MXU matmul, contraction depth K = KH*KW*Cin_p, f32 accumulate.
        acc = jnp.dot(w_ref[...], rhs_ref[...],
                      preferred_element_type=jnp.float32)          # (Cout, L)

        # 3) Bias + compaction: drop the (Ws - Wout) halo columns of each row and
        #    store directly in NCHW layout (no XLA reshape/slice epilogue).
        bias = b_ref[...]                                          # (Cout, 1)
        for r in range(R):
            o_ref[:, r, :] = (acc[:, r * Ws:r * Ws + Wout] + bias).astype(o_ref.dtype)

    return kernel


def _pick_row_block(hout, tile_bytes, budget=16 * 1024 * 1024):
    """Largest multiple-of-8 row tile (<=32) that divides Hout and fits budget."""
    fitting = [r for r in (32, 24, 16, 8) if hout % r == 0 and tile_bytes(r) <= budget]
    if fitting:
        return fitting[0]
    divisors = [r for r in (8, 16, 24, 32) if hout % r == 0]
    if divisors:
        return divisors[0]
    # TODO(synk): support Hout not divisible by 8 via partial last row blocks
    # instead of falling back to a whole-image tile.
    return hout


# ------------------------------------------------------------------
# ConvLayer forward: reflection pad -> conv2d (fused Pallas kernel)
# ------------------------------------------------------------------
def conv_layer_forward(x, weight, bias, *, stride, rows_per_block=None):
    """x: (N, Cin, H, W); weight: (Cout, Cin, KH, KW); bias: (Cout,). NCHW f32 out."""
    N, Cin, H, W = x.shape
    Cout, Cin_w, KH, KW = weight.shape
    assert Cin_w == Cin and KH == KW, "module passes a single square kernel_size"
    s = int(stride)
    pad = KH // 2  # int(np.floor(kernel_size / 2))

    # ---- prologue (XLA): cast early, reflect pad, (s2d), row-window gather ----
    xb = x.astype(jnp.bfloat16)                     # cast BEFORE padding: half the bytes
    x_pad = jnp.pad(xb, ((0, 0), (0, 0), (pad, pad), (pad, pad)), mode="reflect")
    Hp0, Wp0 = H + 2 * pad, W + 2 * pad
    Hout = (Hp0 - KH) // s + 1
    Wout = (Wp0 - KW) // s + 1

    # Pad channels to a multiple of 8 so every per-tap slab is sublane-aligned in
    # the kernel (and stride>1 channel blocks start on aligned rows).
    Cin_p = -(-Cin // 8) * 8
    if Cin_p != Cin:
        x_pad = jnp.pad(x_pad, ((0, 0), (0, Cin_p - Cin), (0, 0), (0, 0)))

    if s > 1:
        # Space-to-depth so every conv tap becomes a stride-1 shifted view.
        Hp, Wp = -(-Hp0 // s) * s, -(-Wp0 // s) * s
        x_pad = jnp.pad(x_pad, ((0, 0), (0, 0), (0, Hp - Hp0), (0, Wp - Wp0)))
        xs = x_pad.reshape(N, Cin_p, Hp // s, s, Wp // s, s)
        xs = xs.transpose(0, 3, 5, 1, 2, 4).reshape(N, s * s * Cin_p, Hp // s, Wp // s)
    else:
        xs = x_pad
    Cp, Hs, Ws = xs.shape[1], xs.shape[2], xs.shape[3]

    # Static per-tap (channel-block, lane-offset) pairs in the s2d image.
    QH, QW = (KH - 1) // s, (KW - 1) // s
    taps = []
    for kh in range(KH):
        for kw in range(KW):
            co = ((kh % s) * s + (kw % s)) * Cin_p
            lo = (kh // s) * Ws + (kw // s)
            taps.append((co, lo))
    K = len(taps) * Cin_p
    halo = QH + (1 if QW > 0 else 0)   # extra rows so every tap slice stays in-block

    # Row-block size: biggest multiple-of-8 tile that divides Hout and fits VMEM.
    def tile_bytes(r):
        l = r * Ws
        return (2 * Cp * (r + halo) * Ws * 2      # double-buffered input window (bf16)
                + 2 * Cout * r * Wout * 4         # double-buffered output tile (f32)
                + K * l * 2 + Cout * l * 4        # RHS scratch + f32 accumulator
                + Cout * K * 2)                   # resident weights

    if rows_per_block is None:
        R = _pick_row_block(Hout, tile_bytes)
    else:
        R = int(rows_per_block)
        assert Hout % R == 0 and (R % 8 == 0 or R == Hout), \
            "rows_per_block must divide Hout and be a multiple of 8 (or == Hout)"
    Hb = Hout // R
    Rh = R + halo
    L = R * Ws

    # Gather overlapping row windows: (N, Hb, Cp, Rh*Ws).  ~(R+halo)/R input
    # duplication buys fully static in-kernel indexing + per-block DMA pipelining.
    row_idx = jnp.minimum(
        jnp.arange(Hb, dtype=jnp.int32)[:, None] * R
        + jnp.arange(Rh, dtype=jnp.int32)[None, :],
        Hs - 1)                                           # (Hb, Rh), clamp only feeds
    xw = jnp.take(xs, row_idx, axis=2)                    # dropped halo columns
    xw = xw.transpose(0, 2, 1, 3, 4).reshape(N, Hb, Cp, Rh * Ws)

    # Folded weights: w2[o, (kh*KW + kw)*Cin_p + c] = weight[o, c, kh, kw].
    w2 = jnp.pad(weight, ((0, 0), (0, Cin_p - Cin), (0, 0), (0, 0)))
    w2 = w2.transpose(0, 2, 3, 1).reshape(Cout, K).astype(jnp.bfloat16)
    bias_col = bias.reshape(Cout, 1).astype(jnp.float32)

    kernel = _make_conv_kernel(tuple(taps), Cin_p, R, Ws, Wout, L)

    out = pl.pallas_call(
        kernel,
        out_shape=jax.ShapeDtypeStruct((N, Cout, Hout, Wout), jnp.float32),
        grid_spec=pltpu.PrefetchScalarGridSpec(
            num_scalar_prefetch=0,
            grid=(N, Hb),
            in_specs=[
                pl.BlockSpec((None, None, Cp, Rh * Ws), lambda n, r: (n, r, 0, 0)),
                pl.BlockSpec((Cout, K), lambda n, r: (0, 0)),        # weights (resident)
                pl.BlockSpec((Cout, 1), lambda n, r: (0, 0)),        # bias (resident)
            ],
            out_specs=pl.BlockSpec((None, Cout, R, Wout), lambda n, r: (n, 0, r, 0)),
            scratch_shapes=[pltpu.VMEM((K, L), jnp.bfloat16)],
        ),
        compiler_params=pltpu.CompilerParams(
            dimension_semantics=("parallel", "parallel"),
            vmem_limit_bytes=48 * 1024 * 1024,   # tiles are budgeted to ~16 MiB
        ),
    )(xw, w2, bias_col)
    return out


# ------------------------------------------------------------------
# Reference (pure JAX / XLA conv) for the correctness check.
# ------------------------------------------------------------------
def conv_layer_reference(x, weight, bias, *, stride):
    pad = weight.shape[2] // 2
    x_pad = jnp.pad(x, ((0, 0), (0, 0), (pad, pad), (pad, pad)), mode="reflect")
    out = lax.conv_general_dilated(
        x_pad, weight,
        window_strides=(stride, stride),
        padding="VALID",
        dimension_numbers=("NCHW", "OIHW", "NCHW"),
        precision=lax.Precision.HIGHEST,
    )
    return out + bias.reshape(1, -1, 1, 1)


if __name__ == "__main__":
    master_key = jax.random.PRNGKey(0)

    def run_case(name, *, N, Cin, H, W, Cout, k, stride, rows_per_block=None, key=None):
        k_x, k_w, k_b = jax.random.split(key, 3)
        x = jax.random.normal(k_x, (N, Cin, H, W), dtype=jnp.float32)
        weight = jax.random.normal(k_w, (Cout, Cin, k, k), dtype=jnp.float32) * 0.1
        bias = jax.random.normal(k_b, (Cout,), dtype=jnp.float32) * 0.1

        fwd = jax.jit(functools.partial(conv_layer_forward, stride=stride,
                                        rows_per_block=rows_per_block))
        out = jax.block_until_ready(fwd(x, weight, bias))

        pad = k // 2
        Hout = (H + 2 * pad - k) // stride + 1
        Wout = (W + 2 * pad - k) // stride + 1
        assert out.shape == (N, Cout, Hout, Wout), (name, out.shape)

        # Compare against an f32 reference on the same bf16-rounded operands
        # (the kernel feeds bf16 to the MXU and accumulates in f32).
        ref = conv_layer_reference(
            x.astype(jnp.bfloat16).astype(jnp.float32),
            weight.astype(jnp.bfloat16).astype(jnp.float32),
            bias, stride=stride)
        max_err = float(jnp.max(jnp.abs(out - ref)))
        assert jnp.allclose(out, ref, atol=2e-3, rtol=2e-3), (name, max_err)

    keys = jax.random.split(master_key, 4)
    # ConvLayer(4, 8, 3, 1) at 16x16 — auto row-block size.
    run_case("3x3_s1", N=2, Cin=4, H=16, W=16, Cout=8, k=3, stride=1, key=keys[0])
    # Same layer with forced 8-row tiles -> exercises the multi-row-block grid.
    run_case("3x3_s1_tiled", N=2, Cin=4, H=16, W=16, Cout=8, k=3, stride=1,
             rows_per_block=8, key=keys[1])
    # Downsampling layer: stride 2, odd channel count and odd spatial size.
    run_case("3x3_s2", N=1, Cin=3, H=17, W=17, Cout=8, k=3, stride=2, key=keys[2])
    # Larger receptive field (style-transfer nets use 5x5 / 9x9 heads).
    run_case("5x5_s1", N=1, Cin=4, H=12, W=12, Cout=8, k=5, stride=1, key=keys[3])

    print("KERNEL_OK")
</pallas_src>

<mosaic_0001>
module attributes {stable_mosaic.version = 11 : i64} {
  func.func @kernel(%arg0: i32, %arg1: i32, %arg2: memref<1x1x8x342xbf16, #tpu.memory_space<vmem>>, %arg3: memref<8x72xbf16, #tpu.memory_space<vmem>>, %arg4: memref<8x1xf32, #tpu.memory_space<vmem>>, %arg5: memref<1x8x16x16xf32, #tpu.memory_space<vmem>>, %arg6: memref<72x288xbf16, #tpu.memory_space<vmem>>) attributes {dimension_semantics = [#tpu.dimension_semantics<parallel>, #tpu.dimension_semantics<parallel>], iteration_bounds = array<i64: 2, 1>, scalar_prefetch = 0 : i64, scratch_operands = 1 : i64, tpu.core_type = #tpu.core_type<tc>, window_params = [{transform_indices = @transform_0, window_bounds = array<i64: 1, 1, 8, 342>}, {pipeline_mode = #tpu.pipeline_mode<synchronous>, transform_indices = @transform_1, window_bounds = array<i64: 8, 72>}, {pipeline_mode = #tpu.pipeline_mode<synchronous>, transform_indices = @transform_2, window_bounds = array<i64: 8, 1>}, {transform_indices = @transform_3, window_bounds = array<i64: 1, 8, 16, 16>}]} {
    %c0 = arith.constant 0 : index
    %c0_0 = arith.constant 0 : index
    %c0_1 = arith.constant 0 : index
    %c0_2 = arith.constant 0 : index
    %0 = vector.load %arg2[%c0, %c0_0, %c0_1, %c0_2] : memref<1x1x8x342xbf16, #tpu.memory_space<vmem>>, vector<1x1x8x288xbf16>
    %1 = vector.shape_cast %0 : vector<1x1x8x288xbf16> to vector<8x288xbf16>
    %c0_3 = arith.constant 0 : index
    %c0_4 = arith.constant 0 : index
    %2 = vector.load %arg6[%c0_3, %c0_4] : memref<72x288xbf16, #tpu.memory_space<vmem>>, vector<8x288xbf16>
    tpu.vector_store %arg6[%c0_3, %c0_4], %1 {strides = array<i32>} : memref<72x288xbf16, #tpu.memory_space<vmem>>, vector<8x288xbf16>,
    %c0_5 = arith.constant 0 : index
    %c0_6 = arith.constant 0 : index
    %c0_7 = arith.constant 0 : index
    %c1 = arith.constant 1 : index
    %3 = vector.load %arg2[%c0_5, %c0_6, %c0_7, %c1] : memref<1x1x8x342xbf16, #tpu.memory_space<vmem>>, vector<1x1x8x288xbf16>
    %4 = vector.shape_cast %3 : vector<1x1x8x288xbf16> to vector<8x288xbf16>
    %c8 = arith.constant 8 : index
    %c0_8 = arith.constant 0 : index
    %5 = vector.load %arg6[%c8, %c0_8] : memref<72x288xbf16, #tpu.memory_space<vmem>>, vector<8x288xbf16>
    tpu.vector_store %arg6[%c8, %c0_8], %4 {strides = array<i32>} : memref<72x288xbf16, #tpu.memory_space<vmem>>, vector<8x288xbf16>,
    %c0_9 = arith.constant 0 : index
    %c0_10 = arith.constant 0 : index
    %c0_11 = arith.constant 0 : index
    %c2 = arith.constant 2 : index
    %6 = vector.load %arg2[%c0_9, %c0_10, %c0_11, %c2] : memref<1x1x8x342xbf16, #tpu.memory_space<vmem>>, vector<1x1x8x288xbf16>
    %7 = vector.shape_cast %6 : vector<1x1x8x288xbf16> to vector<8x288xbf16>
    %c16 = arith.constant 16 : index
    %c0_12 = arith.constant 0 : index
    %8 = vector.load %arg6[%c16, %c0_12] : memref<72x288xbf16, #tpu.memory_space<vmem>>, vector<8x288xbf16>
    tpu.vector_store %arg6[%c16, %c0_12], %7 {strides = array<i32>} : memref<72x288xbf16, #tpu.memory_space<vmem>>, vector<8x288xbf16>,
    %c0_13 = arith.constant 0 : index
    %c0_14 = arith.constant 0 : index
    %c0_15 = arith.constant 0 : index
    %c18 = arith.constant 18 : index
    %9 = vector.load %arg2[%c0_13, %c0_14, %c0_15, %c18] : memref<1x1x8x342xbf16, #tpu.memory_space<vmem>>, vector<1x1x8x288xbf16>
    %10 = vector.shape_cast %9 : vector<1x1x8x288xbf16> to vector<8x288xbf16>
    %c24 = arith.constant 24 : index
    %c0_16 = arith.constant 0 : index
    %11 = vector.load %arg6[%c24, %c0_16] : memref<72x288xbf16, #tpu.memory_space<vmem>>, vector<8x288xbf16>
    tpu.vector_store %arg6[%c24, %c0_16], %10 {strides = array<i32>} : memref<72x288xbf16, #tpu.memory_space<vmem>>, vector<8x288xbf16>,
    %c0_17 = arith.constant 0 : index
    %c0_18 = arith.constant 0 : index
    %c0_19 = arith.constant 0 : index
    %c19 = arith.constant 19 : index
    %12 = vector.load %arg2[%c0_17, %c0_18, %c0_19, %c19] : memref<1x1x8x342xbf16, #tpu.memory_space<vmem>>, vector<1x1x8x288xbf16>
    %13 = vector.shape_cast %12 : vector<1x1x8x288xbf16> to vector<8x288xbf16>
    %c32 = arith.constant 32 : index
    %c0_20 = arith.constant 0 : index
    %14 = vector.load %arg6[%c32, %c0_20] : memref<72x288xbf16, #tpu.memory_space<vmem>>, vector<8x288xbf16>
    tpu.vector_store %arg6[%c32, %c0_20], %13 {strides = array<i32>} : memref<72x288xbf16, #tpu.memory_space<vmem>>, vector<8x288xbf16>,
    %c0_21 = arith.constant 0 : index
    %c0_22 = arith.constant 0 : index
    %c0_23 = arith.constant 0 : index
    %c20 = arith.constant 20 : index
    %15 = vector.load %arg2[%c0_21, %c0_22, %c0_23, %c20] : memref<1x1x8x342xbf16, #tpu.memory_space<vmem>>, vector<1x1x8x288xbf16>
    %16 = vector.shape_cast %15 : vector<1x1x8x288xbf16> to vector<8x288xbf16>
    %c40 = arith.constant 40 : index
    %c0_24 = arith.constant 0 : index
    %17 = vector.load %arg6[%c40, %c0_24] : memref<72x288xbf16, #tpu.memory_space<vmem>>, vector<8x288xbf16>
    tpu.vector_store %arg6[%c40, %c0_24], %16 {strides = array<i32>} : memref<72x288xbf16, #tpu.memory_space<vmem>>, vector<8x288xbf16>,
    %c0_25 = arith.constant 0 : index
    %c0_26 = arith.constant 0 : index
    %c0_27 = arith.constant 0 : index
    %c36 = arith.constant 36 : index
    %18 = vector.load %arg2[%c0_25, %c0_26, %c0_27, %c36] : memref<1x1x8x342xbf16, #tpu.memory_space<vmem>>, vector<1x1x8x288xbf16>
    %19 = vector.shape_cast %18 : vector<1x1x8x288xbf16> to vector<8x288xbf16>
    %c48 = arith.constant 48 : index
    %c0_28 = arith.constant 0 : index
    %20 = vector.load %arg6[%c48, %c0_28] : memref<72x288xbf16, #tpu.memory_space<vmem>>, vector<8x288xbf16>
    tpu.vector_store %arg6[%c48, %c0_28], %19 {strides = array<i32>} : memref<72x288xbf16, #tpu.memory_space<vmem>>, vector<8x288xbf16>,
    %c0_29 = arith.constant 0 : index
    %c0_30 = arith.constant 0 : index
    %c0_31 = arith.constant 0 : index
    %c37 = arith.constant 37 : index
    %21 = vector.load %arg2[%c0_29, %c0_30, %c0_31, %c37] : memref<1x1x8x342xbf16, #tpu.memory_space<vmem>>, vector<1x1x8x288xbf16>
    %22 = vector.shape_cast %21 : vector<1x1x8x288xbf16> to vector<8x288xbf16>
    %c56 = arith.constant 56 : index
    %c0_32 = arith.constant 0 : index
    %23 = vector.load %arg6[%c56, %c0_32] : memref<72x288xbf16, #tpu.memory_space<vmem>>, vector<8x288xbf16>
    tpu.vector_store %arg6[%c56, %c0_32], %22 {strides = array<i32>} : memref<72x288xbf16, #tpu.memory_space<vmem>>, vector<8x288xbf16>,
    %c0_33 = arith.constant 0 : index
    %c0_34 = arith.constant 0 : index
    %c0_35 = arith.constant 0 : index
    %c38 = arith.constant 38 : index
    %24 = vector.load %arg2[%c0_33, %c0_34, %c0_35, %c38] : memref<1x1x8x342xbf16, #tpu.memory_space<vmem>>, vector<1x1x8x288xbf16>
    %25 = vector.shape_cast %24 : vector<1x1x8x288xbf16> to vector<8x288xbf16>
    %c64 = arith.constant 64 : index
    %c0_36 = arith.constant 0 : index
    %26 = vector.load %arg6[%c64, %c0_36] : memref<72x288xbf16, #tpu.memory_space<vmem>>, vector<8x288xbf16>
    tpu.vector_store %arg6[%c64, %c0_36], %25 {strides = array<i32>} : memref<72x288xbf16, #tpu.memory_space<vmem>>, vector<8x288xbf16>,
    %c0_37 = arith.constant 0 : index
    %c0_38 = arith.constant 0 : index
    %27 = vector.load %arg3[%c0_37, %c0_38] : memref<8x72xbf16, #tpu.memory_space<vmem>>, vector<8x72xbf16>
    %c0_39 = arith.constant 0 : index
    %c0_40 = arith.constant 0 : index
    %28 = vector.load %arg6[%c0_39, %c0_40] : memref<72x288xbf16, #tpu.memory_space<vmem>>, vector<72x288xbf16>
    %cst = arith.constant dense<0.000000e+00> : vector<8x288xf32>
    %29 = tpu.matmul %27, %28, %cst {dimension_numbers = #tpu.dot_dimension_numbers<[1], [0], [0], [1], [0, 0, 1, 1], [], []>} : vector<8x72xbf16>, vector<72x288xbf16>, vector<8x288xf32> -> vector<8x288xf32>
    %c0_41 = arith.constant 0 : index
    %c0_42 = arith.constant 0 : index
    %30 = vector.load %arg4[%c0_41, %c0_42] : memref<8x1xf32, #tpu.memory_space<vmem>>, vector<8x1xf32>
    %31 = vector.extract_strided_slice %29 {offsets = [0, 0], sizes = [8, 16], strides = [1, 1]} : vector<8x288xf32> to vector<8x16xf32>
    %32 = vector.broadcast %30 : vector<8x1xf32> to vector<8x16xf32>
    %33 = arith.addf %31, %32 : vector<8x16xf32>
    %c0_43 = arith.constant 0 : index
    %c0_44 = arith.constant 0 : index
    %c0_45 = arith.constant 0 : index
    %c0_46 = arith.constant 0 : index
    %34 = vector.load %arg5[%c0_43, %c0_44, %c0_45, %c0_46] : memref<1x8x16x16xf32, #tpu.memory_space<vmem>>, vector<1x8x1x16xf32>
    %35 = vector.shape_cast %34 : vector<1x8x1x16xf32> to vector<8x16xf32>
    %36 = vector.shape_cast %33 : vector<8x16xf32> to vector<1x8x1x16xf32>
    tpu.vector_store %arg5[%c0_43, %c0_44, %c0_45, %c0_46], %36 {strides = array<i32>} : memref<1x8x16x16xf32, #tpu.memory_space<vmem>>, vector<1x8x1x16xf32>,
    %37 = vector.extract_strided_slice %29 {offsets = [0, 18], sizes = [8, 16], strides = [1, 1]} : vector<8x288xf32> to vector<8x16xf32>
    %38 = vector.broadcast %30 : vector<8x1xf32> to vector<8x16xf32>
    %39 = arith.addf %37, %38 : vector<8x16xf32>
    %c0_47 = arith.constant 0 : index
    %c0_48 = arith.constant 0 : index
    %c1_49 = arith.constant 1 : index
    %c0_50 = arith.constant 0 : index
    %40 = vector.load %arg5[%c0_47, %c0_48, %c1_49, %c0_50] : memref<1x8x16x16xf32, #tpu.memory_space<vmem>>, vector<1x8x1x16xf32>
    %41 = vector.shape_cast %40 : vector<1x8x1x16xf32> to vector<8x16xf32>
    %42 = vector.shape_cast %39 : vector<8x16xf32> to vector<1x8x1x16xf32>
    tpu.vector_store %arg5[%c0_47, %c0_48, %c1_49, %c0_50], %42 {strides = array<i32>} : memref<1x8x16x16xf32, #tpu.memory_space<vmem>>, vector<1x8x1x16xf32>,
    %43 = vector.extract_strided_slice %29 {offsets = [0, 36], sizes = [8, 16], strides = [1, 1]} : vector<8x288xf32> to vector<8x16xf32>
    %44 = vector.broadcast %30 : vector<8x1xf32> to vector<8x16xf32>
    %45 = arith.addf %43, %44 : vector<8x16xf32>
    %c0_51 = arith.constant 0 : index
    %c0_52 = arith.constant 0 : index
    %c2_53 = arith.constant 2 : index
    %c0_54 = arith.constant 0 : index
    %46 = vector.load %arg5[%c0_51, %c0_52, %c2_53, %c0_54] : memref<1x8x16x16xf32, #tpu.memory_space<vmem>>, vector<1x8x1x16xf32>
    %47 = vector.shape_cast %46 : vector<1x8x1x16xf32> to vector<8x16xf32>
    %48 = vector.shape_cast %45 : vector<8x16xf32> to vector<1x8x1x16xf32>
    tpu.vector_store %arg5[%c0_51, %c0_52, %c2_53, %c0_54], %48 {strides = array<i32>} : memref<1x8x16x16xf32, #tpu.memory_space<vmem>>, vector<1x8x1x16xf32>,
    %49 = vector.extract_strided_slice %29 {offsets = [0, 54], sizes = [8, 16], strides = [1, 1]} : vector<8x288xf32> to vector<8x16xf32>
    %50 = vector.broadcast %30 : vector<8x1xf32> to vector<8x16xf32>
    %51 = arith.addf %49, %50 : vector<8x16xf32>
    %c0_55 = arith.constant 0 : index
    %c0_56 = arith.constant 0 : index
    %c3 = arith.constant 3 : index
    %c0_57 = arith.constant 0 : index
    %52 = vector.load %arg5[%c0_55, %c0_56, %c3, %c0_57] : memref<1x8x16x16xf32, #tpu.memory_space<vmem>>, vector<1x8x1x16xf32>
    %53 = vector.shape_cast %52 : vector<1x8x1x16xf32> to vector<8x16xf32>
    %54 = vector.shape_cast %51 : vector<8x16xf32> to vector<1x8x1x16xf32>
    tpu.vector_store %arg5[%c0_55, %c0_56, %c3, %c0_57], %54 {strides = array<i32>} : memref<1x8x16x16xf32, #tpu.memory_space<vmem>>, vector<1x8x1x16xf32>,
    %55 = vector.extract_strided_slice %29 {offsets = [0, 72], sizes = [8, 16], strides = [1, 1]} : vector<8x288xf32> to vector<8x16xf32>
    %56 = vector.broadcast %30 : vector<8x1xf32> to vector<8x16xf32>
    %57 = arith.addf %55, %56 : vector<8x16xf32>
    %c0_58 = arith.constant 0 : index
    %c0_59 = arith.constant 0 : index
    %c4 = arith.constant 4 : index
    %c0_60 = arith.constant 0 : index
    %58 = vector.load %arg5[%c0_58, %c0_59, %c4, %c0_60] : memref<1x8x16x16xf32, #tpu.memory_space<vmem>>, vector<1x8x1x16xf32>
    %59 = vector.shape_cast %58 : vector<1x8x1x16xf32> to vector<8x16xf32>
    %60 = vector.shape_cast %57 : vector<8x16xf32> to vector<1x8x1x16xf32>
    tpu.vector_store %arg5[%c0_58, %c0_59, %c4, %c0_60], %60 {strides = array<i32>} : memref<1x8x16x16xf32, #tpu.memory_space<vmem>>, vector<1x8x1x16xf32>,
    %61 = vector.extract_strided_slice %29 {offsets = [0, 90], sizes = [8, 16], strides = [1, 1]} : vector<8x288xf32> to vector<8x16xf32>
    %62 = vector.broadcast %30 : vector<8x1xf32> to vector<8x16xf32>
    %63 = arith.addf %61, %62 : vector<8x16xf32>
    %c0_61 = arith.constant 0 : index
    %c0_62 = arith.constant 0 : index
    %c5 = arith.constant 5 : index
    %c0_63 = arith.constant 0 : index
    %64 = vector.load %arg5[%c0_61, %c0_62, %c5, %c0_63] : memref<1x8x16x16xf32, #tpu.memory_space<vmem>>, vector<1x8x1x16xf32>
    %65 = vector.shape_cast %64 : vector<1x8x1x16xf32> to vector<8x16xf32>
    %66 = vector.shape_cast %63 : vector<8x16xf32> to vector<1x8x1x16xf32>
    tpu.vector_store %arg5[%c0_61, %c0_62, %c5, %c0_63], %66 {strides = array<i32>} : memref<1x8x16x16xf32, #tpu.memory_space<vmem>>, vector<1x8x1x16xf32>,
    %67 = vector.extract_strided_slice %29 {offsets = [0, 108], sizes = [8, 16], strides = [1, 1]} : vector<8x288xf32> to vector<8x16xf32>
    %68 = vector.broadcast %30 : vector<8x1xf32> to vector<8x16xf32>
    %69 = arith.addf %67, %68 : vector<8x16xf32>
    %c0_64 = arith.constant 0 : index
    %c0_65 = arith.constant 0 : index
    %c6 = arith.constant 6 : index
    %c0_66 = arith.constant 0 : index
    %70 = vector.load %arg5[%c0_64, %c0_65, %c6, %c0_66] : memref<1x8x16x16xf32, #tpu.memory_space<vmem>>, vector<1x8x1x16xf32>
    %71 = vector.shape_cast %70 : vector<1x8x1x16xf32> to vector<8x16xf32>
    %72 = vector.shape_cast %69 : vector<8x16xf32> to vector<1x8x1x16xf32>
    tpu.vector_store %arg5[%c0_64, %c0_65, %c6, %c0_66], %72 {strides = array<i32>} : memref<1x8x16x16xf32, #tpu.memory_space<vmem>>, vector<1x8x1x16xf32>,
    %73 = vector.extract_strided_slice %29 {offsets = [0, 126], sizes = [8, 16], strides = [1, 1]} : vector<8x288xf32> to vector<8x16xf32>
    %74 = vector.broadcast %30 : vector<8x1xf32> to vector<8x16xf32>
    %75 = arith.addf %73, %74 : vector<8x16xf32>
    %c0_67 = arith.constant 0 : index
    %c0_68 = arith.constant 0 : index
    %c7 = arith.constant 7 : index
    %c0_69 = arith.constant 0 : index
    %76 = vector.load %arg5[%c0_67, %c0_68, %c7, %c0_69] : memref<1x8x16x16xf32, #tpu.memory_space<vmem>>, vector<1x8x1x16xf32>
    %77 = vector.shape_cast %76 : vector<1x8x1x16xf32> to vector<8x16xf32>
    %78 = vector.shape_cast %75 : vector<8x16xf32> to vector<1x8x1x16xf32>
    tpu.vector_store %arg5[%c0_67, %c0_68, %c7, %c0_69], %78 {strides = array<i32>} : memref<1x8x16x16xf32, #tpu.memory_space<vmem>>, vector<1x8x1x16xf32>,
    %79 = vector.extract_strided_slice %29 {offsets = [0, 144], sizes = [8, 16], strides = [1, 1]} : vector<8x288xf32> to vector<8x16xf32>
    %80 = vector.broadcast %30 : vector<8x1xf32> to vector<8x16xf32>
    %81 = arith.addf %79, %80 : vector<8x16xf32>
    %c0_70 = arith.constant 0 : index
    %c0_71 = arith.constant 0 : index
    %c8_72 = arith.constant 8 : index
    %c0_73 = arith.constant 0 : index
    %82 = vector.load %arg5[%c0_70, %c0_71, %c8_72, %c0_73] : memref<1x8x16x16xf32, #tpu.memory_space<vmem>>, vector<1x8x1x16xf32>
    %83 = vector.shape_cast %82 : vector<1x8x1x16xf32> to vector<8x16xf32>
    %84 = vector.shape_cast %81 : vector<8x16xf32> to vector<1x8x1x16xf32>
    tpu.vector_store %arg5[%c0_70, %c0_71, %c8_72, %c0_73], %84 {strides = array<i32>} : memref<1x8x16x16xf32, #tpu.memory_space<vmem>>, vector<1x8x1x16xf32>,
    %85 = vector.extract_strided_slice %29 {offsets = [0, 162], sizes = [8, 16], strides = [1, 1]} : vector<8x288xf32> to vector<8x16xf32>
    %86 = vector.broadcast %30 : vector<8x1xf32> to vector<8x16xf32>
    %87 = arith.addf %85, %86 : vector<8x16xf32>
    %c0_74 = arith.constant 0 : index
    %c0_75 = arith.constant 0 : index
    %c9 = arith.constant 9 : index
    %c0_76 = arith.constant 0 : index
    %88 = vector.load %arg5[%c0_74, %c0_75, %c9, %c0_76] : memref<1x8x16x16xf32, #tpu.memory_space<vmem>>, vector<1x8x1x16xf32>
    %89 = vector.shape_cast %88 : vector<1x8x1x16xf32> to vector<8x16xf32>
    %90 = vector.shape_cast %87 : vector<8x16xf32> to vector<1x8x1x16xf32>
    tpu.vector_store %arg5[%c0_74, %c0_75, %c9, %c0_76], %90 {strides = array<i32>} : memref<1x8x16x16xf32, #tpu.memory_space<vmem>>, vector<1x8x1x16xf32>,
    %91 = vector.extract_strided_slice %29 {offsets = [0, 180], sizes = [8, 16], strides = [1, 1]} : vector<8x288xf32> to vector<8x16xf32>
    %92 = vector.broadcast %30 : vector<8x1xf32> to vector<8x16xf32>
    %93 = arith.addf %91, %92 : vector<8x16xf32>
    %c0_77 = arith.constant 0 : index
    %c0_78 = arith.constant 0 : index
    %c10 = arith.constant 10 : index
    %c0_79 = arith.constant 0 : index
    %94 = vector.load %arg5[%c0_77, %c0_78, %c10, %c0_79] : memref<1x8x16x16xf32, #tpu.memory_space<vmem>>, vector<1x8x1x16xf32>
    %95 = vector.shape_cast %94 : vector<1x8x1x16xf32> to vector<8x16xf32>
    %96 = vector.shape_cast %93 : vector<8x16xf32> to vector<1x8x1x16xf32>
    tpu.vector_store %arg5[%c0_77, %c0_78, %c10, %c0_79], %96 {strides = array<i32>} : memref<1x8x16x16xf32, #tpu.memory_space<vmem>>, vector<1x8x1x16xf32>,
    %97 = vector.extract_strided_slice %29 {offsets = [0, 198], sizes = [8, 16], strides = [1, 1]} : vector<8x288xf32> to vector<8x16xf32>
    %98 = vector.broadcast %30 : vector<8x1xf32> to vector<8x16xf32>
    %99 = arith.addf %97, %98 : vector<8x16xf32>
    %c0_80 = arith.constant 0 : index
    %c0_81 = arith.constant 0 : index
    %c11 = arith.constant 11 : index
    %c0_82 = arith.constant 0 : index
    %100 = vector.load %arg5[%c0_80, %c0_81, %c11, %c0_82] : memref<1x8x16x16xf32, #tpu.memory_space<vmem>>, vector<1x8x1x16xf32>
    %101 = vector.shape_cast %100 : vector<1x8x1x16xf32> to vector<8x16xf32>
    %102 = vector.shape_cast %99 : vector<8x16xf32> to vector<1x8x1x16xf32>
    tpu.vector_store %arg5[%c0_80, %c0_81, %c11, %c0_82], %102 {strides = array<i32>} : memref<1x8x16x16xf32, #tpu.memory_space<vmem>>, vector<1x8x1x16xf32>,
    %103 = vector.extract_strided_slice %29 {offsets = [0, 216], sizes = [8, 16], strides = [1, 1]} : vector<8x288xf32> to vector<8x16xf32>
    %104 = vector.broadcast %30 : vector<8x1xf32> to vector<8x16xf32>
    %105 = arith.addf %103, %104 : vector<8x16xf32>
    %c0_83 = arith.constant 0 : index
    %c0_84 = arith.constant 0 : index
    %c12 = arith.constant 12 : index
    %c0_85 = arith.constant 0 : index
    %106 = vector.load %arg5[%c0_83, %c0_84, %c12, %c0_85] : memref<1x8x16x16xf32, #tpu.memory_space<vmem>>, vector<1x8x1x16xf32>
    %107 = vector.shape_cast %106 : vector<1x8x1x16xf32> to vector<8x16xf32>
    %108 = vector.shape_cast %105 : vector<8x16xf32> to vector<1x8x1x16xf32>
    tpu.vector_store %arg5[%c0_83, %c0_84, %c12, %c0_85], %108 {strides = array<i32>} : memref<1x8x16x16xf32, #tpu.memory_space<vmem>>, vector<1x8x1x16xf32>,
    %109 = vector.extract_strided_slice %29 {offsets = [0, 234], sizes = [8, 16], strides = [1, 1]} : vector<8x288xf32> to vector<8x16xf32>
    %110 = vector.broadcast %30 : vector<8x1xf32> to vector<8x16xf32>
    %111 = arith.addf %109, %110 : vector<8x16xf32>
    %c0_86 = arith.constant 0 : index
    %c0_87 = arith.constant 0 : index
    %c13 = arith.constant 13 : index
    %c0_88 = arith.constant 0 : index
    %112 = vector.load %arg5[%c0_86, %c0_87, %c13, %c0_88] : memref<1x8x16x16xf32, #tpu.memory_space<vmem>>, vector<1x8x1x16xf32>
    %113 = vector.shape_cast %112 : vector<1x8x1x16xf32> to vector<8x16xf32>
    %114 = vector.shape_cast %111 : vector<8x16xf32> to vector<1x8x1x16xf32>
    tpu.vector_store %arg5[%c0_86, %c0_87, %c13, %c0_88], %114 {strides = array<i32>} : memref<1x8x16x16xf32, #tpu.memory_space<vmem>>, vector<1x8x1x16xf32>,
    %115 = vector.extract_strided_slice %29 {offsets = [0, 252], sizes = [8, 16], strides = [1, 1]} : vector<8x288xf32> to vector<8x16xf32>
    %116 = vector.broadcast %30 : vector<8x1xf32> to vector<8x16xf32>
    %117 = arith.addf %115, %116 : vector<8x16xf32>
    %c0_89 = arith.constant 0 : index
    %c0_90 = arith.constant 0 : index
    %c14 = arith.constant 14 : index
    %c0_91 = arith.constant 0 : index
    %118 = vector.load %arg5[%c0_89, %c0_90, %c14, %c0_91] : memref<1x8x16x16xf32, #tpu.memory_space<vmem>>, vector<1x8x1x16xf32>
    %119 = vector.shape_cast %118 : vector<1x8x1x16xf32> to vector<8x16xf32>
    %120 = vector.shape_cast %117 : vector<8x16xf32> to vector<1x8x1x16xf32>
    tpu.vector_store %arg5[%c0_89, %c0_90, %c14, %c0_91], %120 {strides = array<i32>} : memref<1x8x16x16xf32, #tpu.memory_space<vmem>>, vector<1x8x1x16xf32>,
    %121 = vector.extract_strided_slice %29 {offsets = [0, 270], sizes = [8, 16], strides = [1, 1]} : vector<8x288xf32> to vector<8x16xf32>
    %122 = vector.broadcast %30 : vector<8x1xf32> to vector<8x16xf32>
    %123 = arith.addf %121, %122 : vector<8x16xf32>
    %c0_92 = arith.constant 0 : index
    %c0_93 = arith.constant 0 : index
    %c15 = arith.constant 15 : index
    %c0_94 = arith.constant 0 : index
    %124 = vector.load %arg5[%c0_92, %c0_93, %c15, %c0_94] : memref<1x8x16x16xf32, #tpu.memory_space<vmem>>, vector<1x8x1x16xf32>
    %125 = vector.shape_cast %124 : vector<1x8x1x16xf32> to vector<8x16xf32>
    %126 = vector.shape_cast %123 : vector<8x16xf32> to vector<1x8x1x16xf32>
    tpu.vector_store %arg5[%c0_92, %c0_93, %c15, %c0_94], %126 {strides = array<i32>} : memref<1x8x16x16xf32, #tpu.memory_space<vmem>>, vector<1x8x1x16xf32>,
    return
  }
  func.func @transform_0(%arg0: i32, %arg1: i32) -> (i32, i32, i32, i32) {
    %c0_i32 = arith.constant 0 : i32
    %c0_i32_0 = arith.constant 0 : i32
    %c0_i32_1 = arith.constant 0 : i32
    return %arg0, %arg1, %c0_i32, %c0_i32_0 : i32, i32, i32, i32
  }
  func.func @transform_1(%arg0: i32, %arg1: i32) -> (i32, i32) {
    %c0_i32 = arith.constant 0 : i32
    %c0_i32_0 = arith.constant 0 : i32
    %c0_i32_1 = arith.constant 0 : i32
    return %c0_i32, %c0_i32_0 : i32, i32
  }
  func.func @transform_2(%arg0: i32, %arg1: i32) -> (i32, i32) {
    %c0_i32 = arith.constant 0 : i32
    %c0_i32_0 = arith.constant 0 : i32
    %c0_i32_1 = arith.constant 0 : i32
    return %c0_i32, %c0_i32_0 : i32, i32
  }
  func.func @transform_3(%arg0: i32, %arg1: i32) -> (i32, i32, i32, i32) {
    %c0_i32 = arith.constant 0 : i32
    %c0_i32_0 = arith.constant 0 : i32
    %c0_i32_1 = arith.constant 0 : i32
    return %arg0, %c0_i32, %arg1, %c0_i32_0 : i32, i32, i32, i32
  }
}

</mosaic_0001>

<bundles_post_ra>
// kernel: conv_layer_forward.1
= control target key start
LH: loop header
LB: loop body
LE: loop exit
PB: predicated region body
PF: predicated region fallthrough
CT: control target
= control target key end

     0   :  { %8 = vsyncpa [#allocation4], 0  ;;  %s2321_s0 = inlined_call_operand.vmem [shape: bf16[2,1,8,342], index: 0, kind: input, shape index: {}]   ;;  %s2322_s1 = inlined_call_operand.vmem [shape: bf16[8,72], index: 1, kind: input, shape index: {}]   ;;  %s2323_s2 = inlined_call_operand.vmem [shape: f32[8,1], index: 2, kind: input, shape index: {}]   ;;  %s2324_s3 = inlined_call_operand.hbm [shape: f32[2,8,16,16], index: 3, kind: output, shape index: {}]  }
   0x1   :  { %10 = vsyncpa [#allocation4 + $0x1], 0  ;;  %s1540_s12 = smov 0   ;;  %s1542_s13 = smov 0  }
   0x2   :  { %s1544_s14 = smov 0   ;;  %s1546_s15 = smov 0  }
   0x3   :  { %s1548_s16 = smov 0   ;;  %s1550_s17 = smov 0  }
   0x4 LB: > { %s1258_s18 = sadd.s32 4294967295, %s1494_s17   ;;  %s1259_s19 = sadd.s32 4294967294, %s1494_s17   ;;  %s1494_s17 = sphi %s1550_s17, %s16_s17   ;;  %s1490_s16 = sphi %s1548_s16, %s2331_s16   ;;  %s1486_s15 = sphi %s1546_s15, %s2330_s15   ;;  %s1482_s14 = sphi %s1544_s14, %s2329_s14   ;;  %s1478_s13 = sphi %s1542_s13, %s2328_s13   ;;  %s1474_s12 = sphi %s1540_s12, %s2327_s12  }
   0x5   : > { %s28_s20 = sadd.s32 1, %s1490_s16  ;;  %s107_s21 = sadd.s32 1, %s1482_s14 }
   0x6   : > { %p30_p0 = scmp.ge.s32.totalorder %s28_s20, 2  ;;  %p117_p1 = scmp.ne.s32.totalorder %s1482_s14, %s1478_s13 }
   0x7   : > { %p118_p2 = scmp.eq.s32.totalorder %s1258_s18, 1  ;;  %p123_p3 = scmp.ne.s32.totalorder %s1478_s13, %s1474_s12 }
   0x8   : > { %s2333_s20 = smov (%p30_p0, %s28_s20), 0  ;;  %p124_p5 = scmp.eq.s32.totalorder %s1259_s19, 1 }
   0x9   : > { %p1580_p4 = por %p118_p2, %p117_p1  ;;  %s102_s23 = ssub.s32 %s1490_s16, %s2333_s20 }
   0xa   : > { %p1262_p6 = scmp.ge.s32.totalorder %s1494_s17, 1  ;;  %p105_p7 = scmp.eq.s32.totalorder %s102_s23, 0 }
   0xb   : > { %p1587_p8 = por %p124_p5, %p123_p3  ;;  %p160_p9 = scmp.lt.s32.totalorder %s1494_s17, 3 }
   0xc   : > { %s1593_s25 = scalar_select %p105_p7, %s1482_s14, %s107_s21  }
   0xd   : > { %p161_p10 = pnand %p1262_p6, %p160_p9 }
   0xe   : > { %p188_p11 = scmp.lt.s32.totalorder (!%p161_p10), %s1486_s15, 1  ;;  %s1496_s4 = smov (!%p161_p10), 126  }
   0xf   : > { %164 = sbr.rel (%p161_p10) target bundleno = 811 (0x32b), region = 32  ;;  %s1497_s5 = smov (!%p161_p10), 127  }
  0x10   : > { %s1498_s6 = smov (!%p161_p10), 110   ;;  %s1499_s7 = smov (!%p161_p10), 109  }
  0x11   : > { %s1500_s8 = smov (!%p161_p10), 108   ;;  %s1501_s9 = smov (!%p161_p10), 92  }
  0x12   : > { %s1502_s10 = smov (!%p161_p10), 91   ;;  %s1503_s11 = smov (!%p161_p10), 90  }
  0x13   : > { %s1505_s29 = smov (!%p161_p10), 74   ;;  %s1515_s18 = smov (!%p161_p10), 22  }
  0x14   : > { %s189_s26 = scalar_select %p188_p11, %s1486_s15, 1  ;;  %vm202_vm0 = vcmask 257024   ;;  %vm214_vm1 = vcmask 1043456   ;;  %vm250_vm2 = vcmask 900096   ;;  %vm233_vm3 = vcmask 1031168   ;;  %v485_v56 = vld [vmem:[%s2323_s2] sm:$0xff] }
  0x15   : > { %vm216_vm4 = vcmask 1039360   ;;  %vm267_vm5 = vcmask 891904   ;;  %vm284_vm6 = vcmask 883712   ;;  %vm301_vm7 = vcmask 752640   ;;  %s1516_s19 = smov 4   ;;  %s1517_s21 = smov 114  }
  0x16   : > { %s1334_s27 = smul.u32 12, %s189_s26  ;;  %vm318_vm8 = vcmask 744448   ;;  %vm335_vm9 = vcmask 736256   ;;  %v1504_v57 = vmov 0   ;;  %vm432_vm10 = vcmask 588800   ;;  %s185_s26 = sand.u32 1, %s1478_s13  }
  0x17   : > { %1414 = vset.pattern.permute.xlu1 %v1504_v57  ;;  %1415 = vset.pattern.permute.xlu0 %v1504_v57  ;;  %vm507_vm11 = vcmask 122880   ;;  %vm721_vm12 = vcmask 1041409   ;;  %vm719_vm13 = vcmask 1040384   ;;  %vm724_vm14 = vcmask 1042434   ;;  %s1333_s23 = sshll.u32 %s1486_s15, 7  ;;  %s1159_s15 = scalar_lea.sflag [#allocation4], %s185_s26 }
  0x18   : > { %s1600_s30 = scalar_lea.vmem %s2321_s0, %s1334_s27  ;;  %s1263_s27 = sshll.u32 %s185_s26, 7  ;;  %vm730_vm15 = vcmask 1044484  }
  0x19   : > { %v222_v0 = vld [vmem:[%s1600_s30] sm:$0xff]  ;;  %v223_v1 = vld [vmem:[%s1600_s30 + $0x8] sm:$0xf]  ;;  %s1647_s28 = scalar_lea.vmem [#allocation3], %s1263_s27 }
  0x1a   : > { %226 = vrot.lane.b32.xlu1 %v222_v0, %s1496_s4  ;;  %208 = vrot.lane.b32.xlu0 %v222_v0, %s1497_s5  ;;  %201 = vst [vmem:[#allocation2] sm:$0xff] %v222_v0  ;;  %v205_v2 = vld [vmem:[%s1600_s30 + $0x8] sm:$0xf] }
  0x1b   : > { %243 = vrot.lane.b32.xlu2 %v222_v0, %s1498_s6  ;;  %v240_v3 = vld [vmem:[%s1600_s30 + $0x8] sm:$0xf] }
  0x1c   : > { %v257_v4 = vld [vmem:[%s1600_s30 + $0x8] sm:$0xf] }
  0x1d   : > { %v274_v5 = vld [vmem:[%s1600_s30 + $0x8] sm:$0xf] }
  0x1e   : > { %v291_v6 = vld [vmem:[%s1600_s30 + $0x8] sm:$0xf] }
  0x1f   : > { %v308_v7 = vld [vmem:[%s1600_s30 + $0x8] sm:$0xf] }
  0x20   : > { %v325_v8 = vld [vmem:[%s1600_s30 + $0x8] sm:$0xf] }
  0x21   : > { %v200_v10 = vld [vmem:[%s1600_s30 + $0x8] sm:$0xf]  ;;  %s1506_s30 = smov 20  }
  0x22   : > { %228 = vrot.lane.b32.xlu1 %v223_v1, %s1496_s4  ;;  %210 = vrot.lane.b32.xlu0 %v205_v2, %s1497_s5  ;;  %203 = vst.msk [vmem:[#allocation2 + $0x8] sm:$0xf] %vm202_vm0, %v200_v10  ;;  %s1507_s4 = smov 38   ;;  %s1508_s5 = smov 56  }
  0x23   : > { %245 = vrot.lane.b32.xlu2 %v240_v3, %s1498_s6 }
  0x2a   : > { %262 = vrot.lane.b32.xlu1 %v257_v4, %s1499_s7  ;;  %260 = vrot.lane.b32.xlu0 %v222_v0, %s1499_s7  ;;  %s1509_s7 = smov 76  }
  0x2b   : > { %277 = vrot.lane.b32.xlu2 %v222_v0, %s1500_s8 }
  0x32   : > { %294 = vrot.lane.b32.xlu1 %v222_v0, %s1501_s9  ;;  %279 = vrot.lane.b32.xlu0 %v274_v5, %s1500_s8  ;;  %s1510_s8 = smov 112  }
  0x33   : > { %296 = vrot.lane.b32.xlu2 %v291_v6, %s1501_s9 }
  0x3a   : > { %313 = vrot.lane.b32.xlu1 %v308_v7, %s1502_s10  ;;  %311 = vrot.lane.b32.xlu0 %v222_v0, %s1502_s10  ;;  %s1511_s10 = smov 94  }
  0x3b   : > { %328 = vrot.lane.b32.xlu2 %v222_v0, %s1503_s11 }
  0x42   : > { %330 = vrot.lane.b32.xlu0 %v325_v8, %s1503_s11  ;;  %488 = vperm.xlu1 %1414, %v485_v56   ;;  %s1512_s11 = smov 58  }
  0x75   : > { %v244_v9 = vpop.permute.xlu2 %243 }
  0x76   : > { %v247_v11 = vrot.slane %v244_v9, 4 }
  0x7d   : > { %v246_v12 = vpop.permute.xlu2 %245 }
  0x7e   : > { %v248_v13 = vrot.slane %v246_v12, 4  ;;  %255 = vst.msk [vmem:[#allocation2 + $0x2c] sm:$0xf] %vm202_vm0, %v246_v12 }
  0x80   : > { %v249_v14 = vsel %vm214_vm1, %v247_v11, %v248_v13 }
  0x81   : > { %v251_v15 = vsel %vm250_vm2, %v244_v9, %v249_v14  ;;  %vm739_vm2 = vcmask 1046528  }
  0x82   : > { %254 = vst [vmem:[#allocation2 + $0x24] sm:$0xff] %v251_v15 }
  0x85   : > { %v278_v16 = vpop.permute.xlu2 %277 }
  0x86   : > { %v281_v36 = vrot.slane %v278_v16, 4 }
  0x8c   : > { %v227_v17 = vpop.permute.xlu1 %226  ;;  %v209_v18 = vpop.permute.xlu0 %208 }
  0x8d   : > { %v297_v19 = vpop.permute.xlu2 %296  ;;  %v230_v20 = vrot.slane %v227_v17, 4  ;;  %v212_v23 = vrot.slane %v209_v18, 4 }
  0x8e   : > { %306 = vst.msk [vmem:[#allocation2 + $0x50] sm:$0xf] %vm202_vm0, %v297_v19  ;;  %v299_v37 = vrot.slane %v297_v19, 4 }
  0x94   : > { %v229_v21 = vpop.permute.xlu1 %228  ;;  %v211_v22 = vpop.permute.xlu0 %210 }
  0x95   : > { %v231_v24 = vrot.slane %v229_v21, 4  ;;  %238 = vst.msk [vmem:[#allocation2 + $0x20] sm:$0xf] %vm202_vm0, %v229_v21  ;;  %v213_v25 = vrot.slane %v211_v22, 4  ;;  %v329_v52 = vpop.permute.xlu2 %328  ;;  %v1311_v8 = vld [vmem:[#allocation2 + $0x50] sm:$0xf] }
  0x96   : > { %221 = vst.msk [vmem:[#allocation2 + $0x14] sm:$0xf] %vm202_vm0, %v211_v22  ;;  %v332_v53 = vrot.slane %v329_v52, 4 }
  0x97   : > { %v232_v26 = vsel %vm214_vm1, %v230_v20, %v231_v24  ;;  %v215_v27 = vsel %vm214_vm1, %v212_v23, %v213_v25  ;;  %v1325_v25 = vld [vmem:[#allocation2 + $0x20] sm:$0xf0] }
  0x98   : > { %v234_v28 = vsel %vm233_vm3, %v227_v17, %v232_v26  ;;  %v217_v29 = vsel %vm216_vm4, %v209_v18, %v215_v27  ;;  %vm736_vm3 = vcmask 1046534   ;;  %vm790_vm4 = vcmask 15360  }
  0x99   : > { %237 = vst [vmem:[#allocation2 + $0x18] sm:$0xff] %v234_v28  ;;  %v1281_v28 = vld [vmem:[#allocation2 + $0x24] sm:$0xf0] }
  0x9a   : > { %220 = vst [vmem:[#allocation2 + $0xc] sm:$0xff] %v217_v29  ;;  %v1267_v29 = vld [vmem:[#allocation2] sm:$0xf] }
  0x9c   : > { %v263_v30 = vpop.permute.xlu1 %262  ;;  %v261_v31 = vpop.permute.xlu0 %260 }
  0x9d   : > { %v265_v32 = vrot.slane %v263_v30, 4  ;;  %272 = vst.msk [vmem:[#allocation2 + $0x38] sm:$0xf] %vm202_vm0, %v263_v30  ;;  %v264_v33 = vrot.slane %v261_v31, 4  ;;  %v1287_v30 = vld [vmem:[#allocation2 + $0x20] sm:$0xf] }
  0x9f   : > { %v266_v34 = vsel %vm214_vm1, %v264_v33, %v265_v32 }
  0xa0   : > { %v268_v35 = vsel %vm267_vm5, %v261_v31, %v266_v34  ;;  %v1279_v23 = vld [vmem:[#allocation2 + $0x18] sm:$0xf]  ;;  %v1324_v24 = vld [vmem:[#allocation2 + $0x1c] sm:$0xf]  ;;  %v1326_v31 = vld [vmem:[#allocation2 + $0x28] sm:$0xf0] }
  0xa1   : > { %271 = vst [vmem:[#allocation2 + $0x30] sm:$0xff] %v268_v35  ;;  %v1280_v27 = vor.u32 %v1325_v25, %v1279_v23  ;;  %v1284_v32 = vor.u32 %v1324_v24, %v1281_v28  ;;  %v1322_v33 = vld [vmem:[#allocation2 + $0x8] sm:$0xf0]  ;;  %v1321_v34 = vld [vmem:[#allocation2 + $0x4] sm:$0xf]  ;;  %vm1087_vm5 = vcmask 31744  }
  0xa2   : > { %v1269_v35 = vld [vmem:[#allocation2 + $0xc] sm:$0xf0] }
  0xa4   : > { %v295_v38 = vpop.permute.xlu1 %294  ;;  %v280_v39 = vpop.permute.xlu0 %279  ;;  %v1299_v20 = vld [vmem:[#allocation2 + $0x38] sm:$0xf] }
  0xa5   : > { %v298_v40 = vrot.slane %v295_v38, 4  ;;  %v282_v41 = vrot.slane %v280_v39, 4  ;;  %289 = vst.msk [vmem:[#allocation2 + $0x44] sm:$0xf] %vm202_vm0, %v280_v39  ;;  %v1323_v39 = vld [vmem:[#allocation2 + $0x10] sm:$0xf0] }
  0xa7   : > { %v283_v42 = vsel %vm214_vm1, %v281_v36, %v282_v41  ;;  %v300_v43 = vsel %vm214_vm1, %v298_v40, %v299_v37  ;;  %v1288_v36 = vor.u32 %v1326_v31, %v1287_v30  ;;  %v1268_v37 = vor.u32 %v1322_v33, %v1267_v29  ;;  %v341_v41 = vld [vmem:[%s2322_s1] sm:$0xf] }
  0xa8   : > { %v285_v44 = vsel %vm284_vm6, %v278_v16, %v283_v42  ;;  %v302_v45 = vsel %vm301_vm7, %v295_v38, %v300_v43  ;;  %v1291_v16 = vld [vmem:[#allocation2 + $0x30] sm:$0xf]  ;;  %v1327_v19 = vld [vmem:[#allocation2 + $0x34] sm:$0xf]  ;;  %v1275_v38 = vld [vmem:[#allocation2 + $0x8] sm:$0xf]  ;;  %v1272_v40 = vor.u32 %v1321_v34, %v1269_v35 }
  0xa9   : > { %288 = vst [vmem:[#allocation2 + $0x3c] sm:$0xff] %v285_v44  ;;  %v1276_v42 = vor.u32 %v1323_v39, %v1275_v38 }
  0xaa   : > { %305 = vst [vmem:[#allocation2 + $0x48] sm:$0xff] %v302_v45 }
  0xac   : > { %v314_v46 = vpop.permute.xlu1 %313  ;;  %v312_v47 = vpop.permute.xlu0 %311  ;;  %v1329_v21 = vld [vmem:[#allocation2 + $0x40] sm:$0xf0] }
  0xad   : > { %v316_v48 = vrot.slane %v314_v46, 4  ;;  %323 = vst.msk [vmem:[#allocation2 + $0x5c] sm:$0xf] %vm202_vm0, %v314_v46  ;;  %v315_v49 = vrot.slane %v312_v47, 4  ;;  %v1300_v26 = vor.u32 %v1329_v21, %v1299_v20 }
  0xaf   : > { %v317_v50 = vsel %vm214_vm1, %v315_v49, %v316_v48 }
  0xb0   : > { %v319_v51 = vsel %vm318_vm8, %v312_v47, %v317_v50  ;;  %v1328_v14 = vld [vmem:[#allocation2 + $0x38] sm:$0xf0]  ;;  %v1293_v15 = vld [vmem:[#allocation2 + $0x3c] sm:$0xf0] }
  0xb1   : > { %322 = vst [vmem:[#allocation2 + $0x54] sm:$0xff] %v319_v51  ;;  %v1303_v7 = vld [vmem:[#allocation2 + $0x48] sm:$0xf]  ;;  %v1330_v10 = vld [vmem:[#allocation2 + $0x4c] sm:$0xf]  ;;  %v1292_v18 = vor.u32 %v1328_v14, %v1291_v16  ;;  %v1296_v22 = vor.u32 %v1327_v19, %v1293_v15 }
  0xb4   : > { %v331_v54 = vpop.permute.xlu0 %330  ;;  %v1332_v12 = vld [vmem:[#allocation2 + $0x58] sm:$0xf0]  ;;  %v489_v43 = vpop.permute.xlu1 %488 }
  0xb5   : > { %v333_v55 = vrot.slane %v331_v54, 4  ;;  %340 = vst.msk [vmem:[#allocation2 + $0x68] sm:$0xf] %vm202_vm0, %v331_v54  ;;  %v1312_v17 = vor.u32 %v1332_v12, %v1311_v8  ;;  %vm727_vm0 = vcmask 1043459  }
  0xb7   : > { %v334_v58 = vsel %vm214_vm1, %v332_v53, %v333_v55 }
  0xb8   : > { %v336_v59 = vsel %vm335_vm9, %v329_v52, %v334_v58  ;;  %v1331_v4 = vld [vmem:[#allocation2 + $0x50] sm:$0xf0]  ;;  %v1305_v5 = vld [vmem:[#allocation2 + $0x54] sm:$0xf0] }
  0xb9   : > { %v402_v60 = vunpack.c.l.b16 %v336_v59  ;;  %v403_v61 = vunpack.c.h.b16 %v336_v59  ;;  %v1304_v9 = vor.u32 %v1331_v4, %v1303_v7  ;;  %v1308_v13 = vor.u32 %v1330_v10, %v1305_v5 }
  0xbb   : > { %v417_v62 = vpack.c.b16 %v402_v60, %v402_v60  ;;  %v418_v63 = vpack.c.b16 %v403_v61, %v403_v61 }
  0xbc   : > { %v359_v0 = vld [vmem:[#allocation2 + $0x68] sm:$0xf] }
  0xbd   : > { %v404_v1 = vunpack.c.l.b16 %v359_v0  ;;  %v438_v2 = vsel %vm214_vm1, %v417_v62, 0  ;;  %v441_v3 = vsel %vm214_vm1, %v418_v63, 0 }
  0xbe   : > { %449 = vmatpush.bf16.msra.mxu0 %v438_v2  ;;  %462 = vmatpush.bf16.msra.mxu1 %v441_v3 }
  0xbf   : > { %v419_v6 = vpack.c.b16 %v404_v1, %v404_v1 }
  0xc1   : > { %v444_v11 = vsel %vm214_vm1, %v419_v6, 0  ;;  %vm733_vm1 = vcmask 1045509  }
  0xc2   : > { %475 = vmatpush.bf16.msra.mxu2 %v444_v11  ;;  %450 = vmatpush.bf16.msra.mxu0 %v1304_v9 }
  0xc3   : > { %463 = vmatpush.bf16.msra.mxu1 %v1308_v13 }
  0xc6   : > { %476 = vmatpush.bf16.msra.mxu2 %v1312_v17  ;;  %451 = vmatpush.bf16.msra.mxu0 %v1292_v18 }
  0xc7   : > { %464 = vmatpush.bf16.msra.mxu1 %v1296_v22 }
  0xca   : > { %477 = vmatpush.bf16.msra.mxu2 %v1300_v26  ;;  %452 = vmatpush.bf16.msra.mxu0 %v1280_v27 }
  0xcb   : > { %465 = vmatpush.bf16.msra.mxu1 %v1284_v32 }
  0xce   : > { %478 = vmatpush.bf16.msra.mxu2 %v1288_v36  ;;  %453 = vmatpush.bf16.msra.mxu0 %v1268_v37 }
  0xcf   : > { %466 = vmatpush.bf16.msra.mxu1 %v1272_v40 }
  0xd1   : > { %1313 = vmatmul.msk.bf16.vlgmr.msra.gmra.mxu0 %vm432_vm10, %v341_v41 }
  0xd2   : > { %479 = vmatpush.bf16.msra.mxu2 %v1276_v42  ;;  %1314 = vmatmul.msk.bf16.vlgmr.msra.gmra.mxu1 %vm432_vm10, %v341_v41 }
  0xd5   : > { %1315 = vmatmul.msk.bf16.vlgmr.msra.gmra.mxu2 %vm432_vm10, %v341_v41 }
 0x14e   : > { %v455_v44 = vpop.f32.mrf.mxu0 }
 0x14f   : > { %v1645_v45 = vadd.f32 %v489_v43, %v455_v44  ;;  %v468_v46 = vpop.f32.mrf.mxu1 }
 0x150   : > { %v1656_v51 = vadd.f32 %v489_v43, %v468_v46 }
 0x151   : > { %508 = vst.msk [vmem:[%s1647_s28] sm:$0x1] %vm507_vm11, %v1645_v45  ;;  %v516_v47 = vperm.slane %v1645_v45, 0  ;;  %v494_v48 = vrot.slane %v1645_v45, 2  ;;  %v495_v49 = vrot.slane %v1645_v45, 3  ;;  %v497_v50 = vrot.slane %v1645_v45, 5 }
 0x152   : > { %v498_v52 = vrot.slane %v1645_v45, 6  ;;  %v493_v53 = vrot.slane %v1645_v45, 1  ;;  %v496_v54 = vrot.slane %v1645_v45, 4  ;;  %v499_v55 = vrot.slane %v1645_v45, 7 }
 0x153   : > { %588 = vrot.lane.b32.xlu0 %v516_v47, %s1505_s29  ;;  %556 = vrot.lane.b32.xlu1 %v516_v47, %s1501_s9  ;;  %510 = vst.msk [vmem:[%s1647_s28 + $0x20] sm:$0x1] %vm507_vm11, %v494_v48  ;;  %v1682_v57 = vrot.slane %v1656_v51, 7  ;;  %v1751_v9 = vperm.slane %v1656_v51, 0  ;;  %v518_v16 = vperm.slane %v494_v48, 0  ;;  %v1793_v17 = vperm.slane %v495_v49, 0 }
 0x154   : > { %524 = vrot.lane.b32.xlu2 %v516_v47, %s1498_s6  ;;  %511 = vst.msk [vmem:[%s1647_s28 + $0x30] sm:$0x1] %vm507_vm11, %v495_v49  ;;  %v521_v18 = vperm.slane %v497_v50, 0  ;;  %v517_v19 = vperm.slane %v493_v53, 0  ;;  %v1804_v20 = vperm.slane %v498_v52, 0  ;;  %v520_v21 = vperm.slane %v496_v54, 0 }
 0x155   : > { %513 = vst.msk [vmem:[%s1647_s28 + $0x50] sm:$0x1] %vm507_vm11, %v497_v50  ;;  %v1691_v60 = vsel %vm721_vm12, %v1645_v45, %v1682_v57  ;;  %v1702_v62 = vsel %vm719_vm13, %v1645_v45, %v1682_v57  ;;  %v1707_v63 = vsel %vm724_vm14, %v1645_v45, %v1682_v57  ;;  %v1712_v0 = vsel %vm730_vm15, %v1645_v45, %v1682_v57 }
 0x156   : > { %v457_v56 = vpop.f32.mrf.mxu0  ;;  %514 = vst.msk [vmem:[%s1647_s28 + $0x60] sm:$0x1] %vm507_vm11, %v498_v52  ;;  %v1723_v2 = vsel %vm727_vm0, %v1645_v45, %v1682_v57  ;;  %v1728_v3 = vsel %vm733_vm1, %v1645_v45, %v1682_v57  ;;  %v1733_v4 = vsel %vm739_vm2, %v1682_v57, %v1645_v45  ;;  %v1738_v5 = vsel %vm736_vm3, %v1645_v45, %v1682_v57 }
 0x157   : > { %v470_v58 = vpop.f32.mrf.mxu1  ;;  %509 = vst.msk [vmem:[%s1647_s28 + $0x10] sm:$0x1] %vm507_vm11, %v493_v53  ;;  %v523_v22 = vperm.slane %v499_v55, 0  ;;  %v815_v34 = vrot.slane %v1656_v51, 1  ;;  %v816_v36 = vrot.slane %v1656_v51, 2  ;;  %v817_v41 = vrot.slane %v1656_v51, 3 }
 0x158   : > { %v481_v59 = vpop.f32.mrf.mxu2  ;;  %512 = vst.msk [vmem:[%s1647_s28 + $0x40] sm:$0x1] %vm507_vm11, %v496_v54  ;;  %v818_v42 = vrot.slane %v1656_v51, 4  ;;  %v819_v44 = vrot.slane %v1656_v51, 5  ;;  %v820_v50 = vrot.slane %v1656_v51, 6  ;;  %v1924_v54 = vperm.slane %v1682_v57, 0 }
 0x159   : > { %v1693_v61 = vadd.f32 %v489_v43, %v481_v59  ;;  %515 = vst.msk [vmem:[%s1647_s28 + $0x70] sm:$0x1] %vm507_vm11, %v499_v55  ;;  %v1883_v37 = vperm.slane %v815_v34, 0  ;;  %v1885_v38 = vperm.slane %v816_v36, 0  ;;  %v1902_v45 = vperm.slane %v817_v41, 0 }
 0x15a   : > { %v1904_v46 = vperm.slane %v818_v42, 0  ;;  %v1921_v53 = vperm.slane %v820_v50, 0  ;;  %v732_v42 = vrot.slane %v1712_v0, 4 }
 0x15b   : > { %v1715_v1 = vrot.slane %v1693_v61, 7  ;;  %684 = vrot.lane.b32.xlu0 %v516_v47, %s1506_s30  ;;  %652 = vrot.lane.b32.xlu1 %v516_v47, %s1507_s4 }
 0x15c   : > { %620 = vrot.lane.b32.xlu2 %v516_v47, %s1508_s5  ;;  %v1906_v47 = vperm.slane %v819_v44, 0 }
 0x15d   : > { %v1743_v6 = vsel %vm719_vm13, %v1656_v51, %v1715_v1  ;;  %v1748_v7 = vsel %vm724_vm14, %v1656_v51, %v1715_v1  ;;  %v1756_v10 = vsel %vm721_vm12, %v1656_v51, %v1715_v1  ;;  %v1761_v11 = vsel %vm727_vm0, %v1656_v51, %v1715_v1 }
 0x15e   : > { %v1766_v12 = vsel %vm733_vm1, %v1656_v51, %v1715_v1  ;;  %v1777_v13 = vsel %vm730_vm15, %v1656_v51, %v1715_v1  ;;  %v1782_v14 = vsel %vm736_vm3, %v1656_v51, %v1715_v1  ;;  %v1787_v15 = vsel %vm739_vm2, %v1715_v1, %v1656_v51 }
 0x160   : > { %v483_v8 = vpop.f32.mrf.mxu2 }
 0x163   : > { %893 = vrot.lane.b32.xlu1 %v1751_v9, %s1509_s7  ;;  %829 = vrot.lane.b32.xlu0 %v1751_v9, %s1510_s8 }
 0x164   : > { %861 = vrot.lane.b32.xlu2 %v1751_v9, %s1511_s10 }
 0x16b   : > { %528 = vrot.lane.b32.xlu1 %v518_v16, %s1498_s6  ;;  %925 = vrot.lane.b32.xlu0 %v1751_v9, %s1512_s11 }
 0x16c   : > { %530 = vrot.lane.b32.xlu2 %v1793_v17, %s1498_s6 }
 0x173   : > { %534 = vrot.lane.b32.xlu1 %v521_v18, %s1498_s6  ;;  %526 = vrot.lane.b32.xlu0 %v517_v19, %s1498_s6 }
 0x174   : > { %536 = vrot.lane.b32.xlu2 %v1804_v20, %s1498_s6 }
 0x17b   : > { %562 = vrot.lane.b32.xlu1 %v1793_v17, %s1501_s9  ;;  %532 = vrot.lane.b32.xlu0 %v520_v21, %s1498_s6 }
 0x17c   : > { %558 = vrot.lane.b32.xlu2 %v517_v19, %s1501_s9 }
 0x183   : > { %568 = vrot.lane.b32.xlu1 %v1804_v20, %s1501_s9  ;;  %538 = vrot.lane.b32.xlu0 %v523_v22, %s1498_s6  ;;  %s1513_s6 = smov 2  }
 0x184   : > { %564 = vrot.lane.b32.xlu2 %v520_v21, %s1501_s9 }
 0x18b   : > { %590 = vrot.lane.b32.xlu1 %v517_v19, %s1505_s29  ;;  %560 = vrot.lane.b32.xlu0 %v518_v16, %s1501_s9 }
 0x18c   : > { %570 = vrot.lane.b32.xlu2 %v523_v22, %s1501_s9 }
 0x193   : > { %596 = vrot.lane.b32.xlu1 %v520_v21, %s1505_s29  ;;  %566 = vrot.lane.b32.xlu0 %v521_v18, %s1501_s9  ;;  %s1514_s9 = smov 40  }
 0x194   : > { %592 = vrot.lane.b32.xlu2 %v518_v16, %s1505_s29 }
 0x19b   : > { %602 = vrot.lane.b32.xlu1 %v523_v22, %s1505_s29  ;;  %594 = vrot.lane.b32.xlu0 %v1793_v17, %s1505_s29 }
 0x19c   : > { %598 = vrot.lane.b32.xlu2 %v521_v18, %s1505_s29 }
 0x1a3   : > { %624 = vrot.lane.b32.xlu1 %v518_v16, %s1508_s5  ;;  %600 = vrot.lane.b32.xlu0 %v1804_v20, %s1505_s29 }
 0x1a4   : > { %626 = vrot.lane.b32.xlu2 %v1793_v17, %s1508_s5 }
 0x1ab   : > { %630 = vrot.lane.b32.xlu1 %v521_v18, %s1508_s5  ;;  %622 = vrot.lane.b32.xlu0 %v517_v19, %s1508_s5 }
 0x1ac   : > { %632 = vrot.lane.b32.xlu2 %v1804_v20, %s1508_s5 }
 0x1ae   : > { %v525_v23 = vpop.permute.xlu2 %524 }
 0x1af   : > { %548 = vst.msk [vmem:[%s1647_s28 + $0x1] sm:$0x1] %vm507_vm11, %v525_v23 }
 0x1b3   : > { %658 = vrot.lane.b32.xlu1 %v1793_v17, %s1507_s4  ;;  %628 = vrot.lane.b32.xlu0 %v520_v21, %s1508_s5 }
 0x1b4   : > { %654 = vrot.lane.b32.xlu2 %v517_v19, %s1507_s4 }
 0x1b6   : > { %v621_v24 = vpop.permute.xlu2 %620 }
 0x1b7   : > { %644 = vst.msk [vmem:[%s1647_s28 + $0x4] sm:$0x1] %vm507_vm11, %v621_v24 }
 0x1bb   : > { %664 = vrot.lane.b32.xlu1 %v1804_v20, %s1507_s4  ;;  %634 = vrot.lane.b32.xlu0 %v523_v22, %s1508_s5 }
 0x1bc   : > { %660 = vrot.lane.b32.xlu2 %v520_v21, %s1507_s4 }
 0x1be   : > { %v862_v25 = vpop.permute.xlu2 %861 }
 0x1bf   : > { %885 = vst.msk [vmem:[%s1647_s28 + $0x9] sm:$0x1] %vm507_vm11, %v862_v25 }
 0x1c3   : > { %686 = vrot.lane.b32.xlu1 %v517_v19, %s1506_s30  ;;  %656 = vrot.lane.b32.xlu0 %v518_v16, %s1507_s4 }
 0x1c4   : > { %666 = vrot.lane.b32.xlu2 %v523_v22, %s1507_s4 }
 0x1c5   : > { %v589_v26 = vpop.permute.xlu0 %588  ;;  %v557_v27 = vpop.permute.xlu1 %556 }
 0x1c6   : > { %612 = vst.msk [vmem:[%s1647_s28 + $0x3] sm:$0x1] %vm507_vm11, %v589_v26  ;;  %v531_v28 = vpop.permute.xlu2 %530 }
 0x1c7   : > { %580 = vst.msk [vmem:[%s1647_s28 + $0x2] sm:$0x1] %vm507_vm11, %v557_v27 }
 0x1c8   : > { %551 = vst.msk [vmem:[%s1647_s28 + $0x31] sm:$0x1] %vm507_vm11, %v531_v28 }
 0x1cb   : > { %692 = vrot.lane.b32.xlu1 %v520_v21, %s1506_s30  ;;  %662 = vrot.lane.b32.xlu0 %v521_v18, %s1507_s4  ;;  %s1173_s4 = sshll.u32 %s1647_s28, 4  ;;  %s1174_s4 = int_to_ptr.vmem [resolvable:$true] %s1173_s4 }
 0x1cc   : > { %688 = vrot.lane.b32.xlu2 %v518_v16, %s1506_s30 }
 0x1cd   : > { %v685_v29 = vpop.permute.xlu0 %684  ;;  %v653_v30 = vpop.permute.xlu1 %652 }
 0x1ce   : > { %708 = vst.msk [vmem:[%s1647_s28 + $0x6] sm:$0x1] %vm507_vm11, %v685_v29  ;;  %v537_v31 = vpop.permute.xlu2 %536  ;;  %v723_v29 = vrot.slane %v1691_v60, 1 }
 0x1cf   : > { %676 = vst.msk [vmem:[%s1647_s28 + $0x5] sm:$0x1] %vm507_vm11, %v653_v30 }
 0x1d0   : > { %554 = vst.msk [vmem:[%s1647_s28 + $0x61] sm:$0x1] %vm507_vm11, %v537_v31  ;;  %v744_v31 = vperm.slane %v723_v29, 0 }
 0x1d3   : > { %698 = vrot.lane.b32.xlu1 %v523_v22, %s1506_s30  ;;  %690 = vrot.lane.b32.xlu0 %v1793_v17, %s1506_s30 }
 0x1d4   : > { %694 = vrot.lane.b32.xlu2 %v521_v18, %s1506_s30 }
 0x1d5   : > { %v894_v32 = vpop.permute.xlu1 %893  ;;  %v830_v33 = vpop.permute.xlu0 %829 }
 0x1d6   : > { %917 = vst.msk [vmem:[%s1647_s28 + $0xa] sm:$0x1] %vm507_vm11, %v894_v32  ;;  %v559_v35 = vpop.permute.xlu2 %558  ;;  %v743_v32 = vperm.slane %v1702_v62, 1 }
 0x1d7   : > { %581 = vst.msk [vmem:[%s1647_s28 + $0x12] sm:$0x1] %vm507_vm11, %v559_v35  ;;  %v726_v35 = vrot.slane %v1707_v63, 2 }
 0x1d8   : > { %853 = vst.msk [vmem:[%s1647_s28 + $0x8] sm:$0x1] %vm507_vm11, %v830_v33  ;;  %v742_v33 = vperm.slane %v1702_v62, 0 }
 0x1d9   : > { %v747_v62 = vperm.slane %v726_v35, 1 }
 0x1db   : > { %696 = vrot.lane.b32.xlu0 %v1804_v20, %s1506_s30  ;;  %831 = vrot.lane.b32.xlu1 %v1883_v37, %s1510_s8  ;;  %s1172_s30 = scalar_lea.hbm %s2324_s3, %s1333_s23 }
 0x1dc   : > { %833 = vrot.lane.b32.xlu2 %v1885_v38, %s1510_s8  ;;  %s1175_s5 = sshll.u32 %s1172_s30, 4  ;;  %s1176_s5 = int_to_ptr.hbm [resolvable:$true] %s1175_s5 }
 0x1dd   : > { %v529_v39 = vpop.permute.xlu1 %528  ;;  %v926_v40 = vpop.permute.xlu0 %925 }
 0x1de   : > { %550 = vst.msk [vmem:[%s1647_s28 + $0x21] sm:$0x1] %vm507_vm11, %v529_v39  ;;  %v565_v43 = vpop.permute.xlu2 %564  ;;  %v746_v39 = vperm.slane %v726_v35, 0  ;;  %v1040_v35 = vperm.slane %v1743_v6, 1 }
 0x1df   : > { %584 = vst.msk [vmem:[%s1647_s28 + $0x42] sm:$0x1] %vm507_vm11, %v565_v43  ;;  %v729_v43 = vrot.slane %v1723_v2, 3 }
 0x1e0   : > { %949 = vst.msk [vmem:[%s1647_s28 + $0xb] sm:$0x1] %vm507_vm11, %v926_v40  ;;  %v745_v40 = vperm.slane %v723_v29, 1 }
 0x1e1   : > { %v748_v50 = vperm.slane %v729_v43, 0 }
 0x1e3   : > { %835 = vrot.lane.b32.xlu0 %v1902_v45, %s1510_s8  ;;  %837 = vrot.lane.b32.xlu1 %v1904_v46, %s1510_s8 }
 0x1e4   : > { %839 = vrot.lane.b32.xlu2 %v1906_v47, %s1510_s8 }
 0x1e5   : > { %v535_v48 = vpop.permute.xlu1 %534  ;;  %v527_v49 = vpop.permute.xlu0 %526 }
 0x1e6   : > { %553 = vst.msk [vmem:[%s1647_s28 + $0x51] sm:$0x1] %vm507_vm11, %v535_v48  ;;  %v571_v52 = vpop.permute.xlu2 %570  ;;  %v750_v48 = vperm.slane %v732_v42, 0 }
 0x1e7   : > { %587 = vst.msk [vmem:[%s1647_s28 + $0x72] sm:$0x1] %vm507_vm11, %v571_v52  ;;  %v735_v52 = vrot.slane %v1728_v3, 5 }
 0x1e8   : > { %549 = vst.msk [vmem:[%s1647_s28 + $0x11] sm:$0x1] %vm507_vm11, %v527_v49  ;;  %v749_v49 = vperm.slane %v729_v43, 1 }
 0x1eb   : > { %841 = vrot.lane.b32.xlu0 %v1921_v53, %s1510_s8  ;;  %843 = vrot.lane.b32.xlu1 %v1924_v54, %s1510_s8 }
 0x1ec   : > { %867 = vrot.lane.b32.xlu2 %v1902_v45, %s1511_s10 }
 0x1ed   : > { %v563_v51 = vpop.permute.xlu1 %562  ;;  %v533_v55 = vpop.permute.xlu0 %532 }
 0x1ee   : > { %583 = vst.msk [vmem:[%s1647_s28 + $0x32] sm:$0x1] %vm507_vm11, %v563_v51  ;;  %v593_v56 = vpop.permute.xlu2 %592 }
 0x1ef   : > { %614 = vst.msk [vmem:[%s1647_s28 + $0x23] sm:$0x1] %vm507_vm11, %v593_v56  ;;  %v752_v56 = vperm.slane %v735_v52, 0 }
 0x1f0   : > { %552 = vst.msk [vmem:[%s1647_s28 + $0x41] sm:$0x1] %vm507_vm11, %v533_v55  ;;  %v753_v55 = vperm.slane %v735_v52, 1 }
 0x1f3   : > { %863 = vrot.lane.b32.xlu0 %v1883_v37, %s1511_s10  ;;  %865 = vrot.lane.b32.xlu1 %v1885_v38, %s1511_s10 }
 0x1f4   : > { %873 = vrot.lane.b32.xlu2 %v1921_v53, %s1511_s10 }
 0x1f5   : > { %v569_v57 = vpop.permute.xlu1 %568  ;;  %v539_v58 = vpop.permute.xlu0 %538 }
 0x1f6   : > { %586 = vst.msk [vmem:[%s1647_s28 + $0x62] sm:$0x1] %vm507_vm11, %v569_v57  ;;  %v599_v59 = vpop.permute.xlu2 %598  ;;  %v751_v57 = vperm.slane %v732_v42, 1 }
 0x1f7   : > { %617 = vst.msk [vmem:[%s1647_s28 + $0x53] sm:$0x1] %vm507_vm11, %v599_v59  ;;  %v741_v59 = vrot.slane %v1733_v4, 7 }
 0x1f8   : > { %555 = vst.msk [vmem:[%s1647_s28 + $0x71] sm:$0x1] %vm507_vm11, %v539_v58 }
 0x1fb   : > { %869 = vrot.lane.b32.xlu0 %v1904_v46, %s1511_s10  ;;  %871 = vrot.lane.b32.xlu1 %v1906_v47, %s1511_s10 }
 0x1fc   : > { %895 = vrot.lane.b32.xlu2 %v1883_v37, %s1509_s7 }
 0x1fd   : > { %v591_v8 = vpop.permute.xlu1 %590  ;;  %v561_v16 = vpop.permute.xlu0 %560 }
 0x1fe   : > { %613 = vst.msk [vmem:[%s1647_s28 + $0x13] sm:$0x1] %vm507_vm11, %v591_v8  ;;  %v627_v17 = vpop.permute.xlu2 %626  ;;  %v738_v8 = vrot.slane %v1738_v5, 6 }
 0x1ff   : > { %647 = vst.msk [vmem:[%s1647_s28 + $0x34] sm:$0x1] %vm507_vm11, %v627_v17  ;;  %v756_v17 = vperm.slane %v741_v59, 0 }
 0x200   : > { %582 = vst.msk [vmem:[%s1647_s28 + $0x22] sm:$0x1] %vm507_vm11, %v561_v16 }
 0x203   : > { %875 = vrot.lane.b32.xlu0 %v1924_v54, %s1511_s10  ;;  %899 = vrot.lane.b32.xlu1 %v1902_v45, %s1509_s7 }
 0x204   : > { %901 = vrot.lane.b32.xlu2 %v1904_v46, %s1509_s7 }
 0x205   : > { %v597_v18 = vpop.permute.xlu1 %596  ;;  %v567_v19 = vpop.permute.xlu0 %566 }
 0x206   : > { %616 = vst.msk [vmem:[%s1647_s28 + $0x43] sm:$0x1] %vm507_vm11, %v597_v18  ;;  %v633_v20 = vpop.permute.xlu2 %632  ;;  %v755_v18 = vperm.slane %v738_v8, 1 }
 0x207   : > { %650 = vst.msk [vmem:[%s1647_s28 + $0x64] sm:$0x1] %vm507_vm11, %v633_v20 }
 0x208   : > { %585 = vst.msk [vmem:[%s1647_s28 + $0x52] sm:$0x1] %vm507_vm11, %v567_v19  ;;  %v754_v19 = vperm.slane %v738_v8, 0 }
 0x20b   : > { %897 = vrot.lane.b32.xlu0 %v1885_v38, %s1509_s7  ;;  %905 = vrot.lane.b32.xlu1 %v1921_v53, %s1509_s7 }
 0x20c   : > { %907 = vrot.lane.b32.xlu2 %v1924_v54, %s1509_s7 }
 0x20d   : > { %v603_v21 = vpop.permute.xlu1 %602  ;;  %v595_v22 = vpop.permute.xlu0 %594 }
 0x20e   : > { %619 = vst.msk [vmem:[%s1647_s28 + $0x73] sm:$0x1] %vm507_vm11, %v603_v21  ;;  %v655_v23 = vpop.permute.xlu2 %654  ;;  %v757_v21 = vperm.slane %v741_v59, 1 }
 0x20f   : > { %677 = vst.msk [vmem:[%s1647_s28 + $0x15] sm:$0x1] %vm507_vm11, %v655_v23 }
 0x210   : > { %615 = vst.msk [vmem:[%s1647_s28 + $0x33] sm:$0x1] %vm507_vm11, %v595_v22 }
 0x213   : > { %903 = vrot.lane.b32.xlu0 %v1906_v47, %s1509_s7  ;;  %927 = vrot.lane.b32.xlu1 %v1883_v37, %s1512_s11  ;;  %s1430_s7 = sshra.s32 %s1176_s5, 4  ;;  %s1431_s7 = int_to_ptr.hbm [resolvable:$true] %s1430_s7 }
 0x214   : > { %929 = vrot.lane.b32.xlu2 %v1885_v38, %s1512_s11  ;;  %s1432_s8 = scalar_lea.hbm %s1431_s7, 128  ;;  %p1437_p1 = scmp.lt.s32.totalorder %s1431_s7, %s2324_s3 }
 0x215   : > { %v625_v24 = vpop.permute.xlu1 %624  ;;  %v601_v25 = vpop.permute.xlu0 %600  ;;  %p1433_p12 = scmp.ne.s32.totalorder %s1431_s7, %s1432_s8 }
 0x216   : > { %646 = vst.msk [vmem:[%s1647_s28 + $0x24] sm:$0x1] %vm507_vm11, %v625_v24  ;;  %v661_v26 = vpop.permute.xlu2 %660 }
 0x217   : > { %680 = vst.msk [vmem:[%s1647_s28 + $0x45] sm:$0x1] %vm507_vm11, %v661_v26  ;;  %p1434_p13 = pnand %p1433_p12, %p1580_p4 }
 0x218   : > { %618 = vst.msk [vmem:[%s1647_s28 + $0x63] sm:$0x1] %vm507_vm11, %v601_v25 }
 0x219   : > { %p1435_p0 = pneg %p1434_p13 }
 0x21b   : > { %931 = vrot.lane.b32.xlu0 %v1902_v45, %s1512_s11  ;;  %933 = vrot.lane.b32.xlu1 %v1904_v46, %s1512_s11 }
 0x21c   : > { %935 = vrot.lane.b32.xlu2 %v1906_v47, %s1512_s11 }
 0x21d   : > { %v631_v27 = vpop.permute.xlu1 %630  ;;  %v623_v28 = vpop.permute.xlu0 %622 }
 0x21e   : > { %649 = vst.msk [vmem:[%s1647_s28 + $0x54] sm:$0x1] %vm507_vm11, %v631_v27  ;;  %v667_v30 = vpop.permute.xlu2 %666 }
 0x21f   : > { %683 = vst.msk [vmem:[%s1647_s28 + $0x75] sm:$0x1] %vm507_vm11, %v667_v30 }
 0x220   : > { %645 = vst.msk [vmem:[%s1647_s28 + $0x14] sm:$0x1] %vm507_vm11, %v623_v28 }
 0x223   : > { %762 = vrot.lane.b32.xlu1 %v744_v31, %s1513_s6  ;;  %760 = vrot.lane.b32.xlu0 %v743_v32, %s1513_s6 }
 0x224   : > { %758 = vrot.lane.b32.xlu2 %v742_v33, %s1513_s6 }
 0x225   : > { %v659_v60 = vpop.permute.xlu1 %658  ;;  %v629_v34 = vpop.permute.xlu0 %628 }
 0x226   : > { %679 = vst.msk [vmem:[%s1647_s28 + $0x35] sm:$0x1] %vm507_vm11, %v659_v60  ;;  %v689_v36 = vpop.permute.xlu2 %688 }
 0x227   : > { %710 = vst.msk [vmem:[%s1647_s28 + $0x26] sm:$0x1] %vm507_vm11, %v689_v36  ;;  %v1028_v36 = vrot.slane %v1748_v7, 2 }
 0x228   : > { %648 = vst.msk [vmem:[%s1647_s28 + $0x44] sm:$0x1] %vm507_vm11, %v629_v34 }
 0x22b   : > { %768 = vrot.lane.b32.xlu1 %v747_v62, %s1513_s6  ;;  %766 = vrot.lane.b32.xlu0 %v746_v39, %s1513_s6  ;;  %v1026_v62 = vrot.slane %v1756_v10, 1 }
 0x22c   : > { %764 = vrot.lane.b32.xlu2 %v745_v40, %s1513_s6 }
 0x22d   : > { %v665_v41 = vpop.permute.xlu1 %664  ;;  %v635_v63 = vpop.permute.xlu0 %634  ;;  %v1042_v40 = vperm.slane %v1026_v62, 1 }
 0x22e   : > { %682 = vst.msk [vmem:[%s1647_s28 + $0x65] sm:$0x1] %vm507_vm11, %v665_v41  ;;  %v695_v44 = vpop.permute.xlu2 %694  ;;  %v1041_v41 = vperm.slane %v1026_v62, 0  ;;  %v1125_v62 = vperm.slane %v1715_v1, 0 }
 0x22f   : > { %713 = vst.msk [vmem:[%s1647_s28 + $0x56] sm:$0x1] %vm507_vm11, %v695_v44  ;;  %v1044_v44 = vperm.slane %v1028_v36, 1 }
 0x230   : > { %651 = vst.msk [vmem:[%s1647_s28 + $0x74] sm:$0x1] %vm507_vm11, %v635_v63  ;;  %v1030_v63 = vrot.slane %v1761_v11, 3  ;;  %v1032_v11 = vrot.slane %v1777_v13, 4  ;;  %v1036_v13 = vrot.slane %v1782_v14, 6 }
 0x232   : > { %v1046_v42 = vperm.slane %v1030_v63, 1  ;;  %v1045_v43 = vperm.slane %v1030_v63, 0  ;;  %v1048_v52 = vperm.slane %v1032_v11, 1  ;;  %v1051_v59 = vperm.slane %v1036_v13, 0 }
 0x233   : > { %774 = vrot.lane.b32.xlu1 %v750_v48, %s1513_s6  ;;  %772 = vrot.lane.b32.xlu0 %v749_v49, %s1513_s6 }
 0x234   : > { %770 = vrot.lane.b32.xlu2 %v748_v50, %s1513_s6  ;;  %v1034_v50 = vrot.slane %v1766_v12, 5 }
 0x235   : > { %v687_v0 = vpop.permute.xlu1 %686  ;;  %v657_v2 = vpop.permute.xlu0 %656 }
 0x236   : > { %709 = vst.msk [vmem:[%s1647_s28 + $0x16] sm:$0x1] %vm507_vm11, %v687_v0  ;;  %v834_v51 = vpop.permute.xlu2 %833  ;;  %v1050_v8 = vperm.slane %v1034_v50, 1 }
 0x237   : > { %678 = vst.msk [vmem:[%s1647_s28 + $0x25] sm:$0x1] %vm507_vm11, %v657_v2  ;;  %v1049_v2 = vperm.slane %v1034_v50, 0 }
 0x238   : > { %855 = vst.msk [vmem:[%s1647_s28 + $0x28] sm:$0x1] %vm507_vm11, %v834_v51  ;;  %v1047_v51 = vperm.slane %v1032_v11, 0 }
 0x23b   : > { %780 = vrot.lane.b32.xlu1 %v753_v55, %s1513_s6  ;;  %778 = vrot.lane.b32.xlu0 %v752_v56, %s1513_s6 }
 0x23c   : > { %776 = vrot.lane.b32.xlu2 %v751_v57, %s1513_s6 }
 0x23d   : > { %v693_v58 = vpop.permute.xlu1 %692  ;;  %v663_v3 = vpop.permute.xlu0 %662 }
 0x23e   : > { %712 = vst.msk [vmem:[%s1647_s28 + $0x46] sm:$0x1] %vm507_vm11, %v693_v58  ;;  %v840_v16 = vpop.permute.xlu2 %839 }
 0x23f   : > { %681 = vst.msk [vmem:[%s1647_s28 + $0x55] sm:$0x1] %vm507_vm11, %v663_v3  ;;  %v1052_v3 = vperm.slane %v1036_v13, 1 }
 0x240   : > { %858 = vst.msk [vmem:[%s1647_s28 + $0x58] sm:$0x1] %vm507_vm11, %v840_v16 }
 0x243   : > { %786 = vrot.lane.b32.xlu1 %v756_v17, %s1513_s6  ;;  %784 = vrot.lane.b32.xlu0 %v755_v18, %s1513_s6  ;;  %v1038_v17 = vrot.slane %v1787_v15, 7 }
 0x244   : > { %782 = vrot.lane.b32.xlu2 %v754_v19, %s1513_s6 }
 0x245   : > { %v699_v4 = vpop.permute.xlu1 %698  ;;  %v691_v5 = vpop.permute.xlu0 %690 }
 0x246   : > { %715 = vst.msk [vmem:[%s1647_s28 + $0x76] sm:$0x1] %vm507_vm11, %v699_v4  ;;  %v868_v20 = vpop.permute.xlu2 %867  ;;  %v1118_v4 = vperm.slane %v1693_v61, 0 }
 0x247   : > { %711 = vst.msk [vmem:[%s1647_s28 + $0x36] sm:$0x1] %vm507_vm11, %v691_v5  ;;  %v1054_v5 = vperm.slane %v1038_v17, 1 }
 0x248   : > { %888 = vst.msk [vmem:[%s1647_s28 + $0x39] sm:$0x1] %vm507_vm11, %v868_v20  ;;  %v1053_v20 = vperm.slane %v1038_v17, 0 }
 0x24b   : > { %939 = vrot.lane.b32.xlu1 %v1924_v54, %s1512_s11  ;;  %937 = vrot.lane.b32.xlu0 %v1921_v53, %s1512_s11 }
 0x24c   : > { %788 = vrot.lane.b32.xlu2 %v757_v21, %s1513_s6  ;;  %s1436_s6 = scalar_lea.hbm %s2324_s3, 256 }
 0x24d   : > { %v697_v22 = vpop.permute.xlu0 %696  ;;  %v832_v23 = vpop.permute.xlu1 %831  ;;  %p1438_p2 = scmp.lt.s32.totalorder %s1436_s6, %s1432_s8 }
 0x24e   : > { %714 = vst.msk [vmem:[%s1647_s28 + $0x66] sm:$0x1] %vm507_vm11, %v697_v22  ;;  %v874_v24 = vpop.permute.xlu2 %873  ;;  %v1114_v22 = vrot.slane %v1693_v61, 3 }
 0x24f   : > { %891 = vst.msk [vmem:[%s1647_s28 + $0x69] sm:$0x1] %vm507_vm11, %v874_v24  ;;  %p1439_p3 = por %p1438_p2, %p1437_p1 }
 0x250   : > { %854 = vst.msk [vmem:[%s1647_s28 + $0x18] sm:$0x1] %vm507_vm11, %v832_v23  ;;  %v1113_v23 = vrot.slane %v1693_v61, 2 }
 0x251   : > { %p1440_p5 = pnand %p1439_p3, %p1435_p0 }
 0x253   : > { %961 = vrot.lane.b32.xlu1 %v1885_v38, %s1514_s9  ;;  %959 = vrot.lane.b32.xlu0 %v1883_v37, %s1514_s9 }
 0x254   : > { %957 = vrot.lane.b32.xlu2 %v1751_v9, %s1514_s9 }
 0x255   : > { %v836_v25 = vpop.permute.xlu0 %835  ;;  %v838_v26 = vpop.permute.xlu1 %837 }
 0x256   : > { %856 = vst.msk [vmem:[%s1647_s28 + $0x38] sm:$0x1] %vm507_vm11, %v836_v25  ;;  %v896_v27 = vpop.permute.xlu2 %895 }
 0x257   : > { %918 = vst.msk [vmem:[%s1647_s28 + $0x1a] sm:$0x1] %vm507_vm11, %v896_v27  ;;  %v1112_v27 = vrot.slane %v1693_v61, 1 }
 0x258   : > { %857 = vst.msk [vmem:[%s1647_s28 + $0x48] sm:$0x1] %vm507_vm11, %v838_v26 }
 0x25b   : > { %967 = vrot.lane.b32.xlu1 %v1906_v47, %s1514_s9  ;;  %965 = vrot.lane.b32.xlu0 %v1904_v46, %s1514_s9 }
 0x25c   : > { %963 = vrot.lane.b32.xlu2 %v1902_v45, %s1514_s9 }
 0x25d   : > { %v842_v28 = vpop.permute.xlu0 %841  ;;  %v844_v29 = vpop.permute.xlu1 %843 }
 0x25e   : > { %859 = vst.msk [vmem:[%s1647_s28 + $0x68] sm:$0x1] %vm507_vm11, %v842_v28  ;;  %v902_v30 = vpop.permute.xlu2 %901  ;;  %v1121_v28 = vperm.slane %v1114_v22, 0 }
 0x25f   : > { %921 = vst.msk [vmem:[%s1647_s28 + $0x4a] sm:$0x1] %vm507_vm11, %v902_v30  ;;  %v1119_v30 = vperm.slane %v1112_v27, 0 }
 0x260   : > { %860 = vst.msk [vmem:[%s1647_s28 + $0x78] sm:$0x1] %vm507_vm11, %v844_v29  ;;  %v1120_v29 = vperm.slane %v1113_v23, 0 }
 0x263   : > { %989 = vrot.lane.b32.xlu1 %v1751_v9, %s1515_s18  ;;  %971 = vrot.lane.b32.xlu0 %v1924_v54, %s1514_s9 }
 0x264   : > { %969 = vrot.lane.b32.xlu2 %v1921_v53, %s1514_s9 }
 0x265   : > { %v864_v31 = vpop.permute.xlu0 %863  ;;  %v866_v32 = vpop.permute.xlu1 %865 }
 0x266   : > { %886 = vst.msk [vmem:[%s1647_s28 + $0x19] sm:$0x1] %vm507_vm11, %v864_v31  ;;  %v908_v33 = vpop.permute.xlu2 %907 }
 0x267   : > { %924 = vst.msk [vmem:[%s1647_s28 + $0x7a] sm:$0x1] %vm507_vm11, %v908_v33  ;;  %v1117_v33 = vrot.slane %v1693_v61, 6 }
 0x268   : > { %887 = vst.msk [vmem:[%s1647_s28 + $0x29] sm:$0x1] %vm507_vm11, %v866_v32 }
 0x26b   : > { %995 = vrot.lane.b32.xlu1 %v1902_v45, %s1515_s18  ;;  %993 = vrot.lane.b32.xlu0 %v1885_v38, %s1515_s18 }
 0x26c   : > { %991 = vrot.lane.b32.xlu2 %v1883_v37, %s1515_s18 }
 0x26d   : > { %v870_v9 = vpop.permute.xlu0 %869  ;;  %v872_v60 = vpop.permute.xlu1 %871 }
 0x26e   : > { %889 = vst.msk [vmem:[%s1647_s28 + $0x49] sm:$0x1] %vm507_vm11, %v870_v9  ;;  %v930_v34 = vpop.permute.xlu2 %929  ;;  %v1116_v9 = vrot.slane %v1693_v61, 5 }
 0x26f   : > { %951 = vst.msk [vmem:[%s1647_s28 + $0x2b] sm:$0x1] %vm507_vm11, %v930_v34 }
 0x270   : > { %890 = vst.msk [vmem:[%s1647_s28 + $0x59] sm:$0x1] %vm507_vm11, %v872_v60 }
 0x273   : > { %1001 = vrot.lane.b32.xlu1 %v1921_v53, %s1515_s18  ;;  %999 = vrot.lane.b32.xlu0 %v1906_v47, %s1515_s18  ;;  %v1039_v53 = vperm.slane %v1743_v6, 0  ;;  %v1043_v6 = vperm.slane %v1028_v36, 0 }
 0x274   : > { %997 = vrot.lane.b32.xlu2 %v1904_v46, %s1515_s18 }
 0x275   : > { %v876_v38 = vpop.permute.xlu0 %875  ;;  %v900_v37 = vpop.permute.xlu1 %899 }
 0x276   : > { %v936_v45 = vpop.permute.xlu2 %935  ;;  %892 = vst.msk [vmem:[%s1647_s28 + $0x79] sm:$0x1] %vm507_vm11, %v876_v38  ;;  %v1115_v38 = vrot.slane %v1693_v61, 4 }
 0x277   : > { %954 = vst.msk [vmem:[%s1647_s28 + $0x5b] sm:$0x1] %vm507_vm11, %v936_v45  ;;  %v1123_v45 = vperm.slane %v1116_v9, 0 }
 0x278   : > { %920 = vst.msk [vmem:[%s1647_s28 + $0x3a] sm:$0x1] %vm507_vm11, %v900_v37  ;;  %v1124_v37 = vperm.slane %v1117_v33, 0 }
 0x27b   : > { %1057 = vrot.lane.b32.xlu1 %v1040_v35, %s1516_s19  ;;  %1055 = vrot.lane.b32.xlu0 %v1039_v53, %s1516_s19  ;;  %v1122_v35 = vperm.slane %v1115_v38, 0 }
 0x27c   : > { %1003 = vrot.lane.b32.xlu2 %v1924_v54, %s1515_s18 }
 0x27d   : > { %v898_v46 = vpop.permute.xlu0 %897  ;;  %v906_v47 = vpop.permute.xlu1 %905 }
 0x27e   : > { %919 = vst.msk [vmem:[%s1647_s28 + $0x2a] sm:$0x1] %vm507_vm11, %v898_v46  ;;  %v759_v39 = vpop.permute.xlu2 %758 }
 0x27f   : > { %923 = vst.msk [vmem:[%s1647_s28 + $0x6a] sm:$0x1] %vm507_vm11, %v906_v47 }
 0x283   : > { %1063 = vrot.lane.b32.xlu1 %v1043_v6, %s1516_s19  ;;  %1061 = vrot.lane.b32.xlu0 %v1042_v40, %s1516_s19 }
 0x284   : > { %1059 = vrot.lane.b32.xlu2 %v1041_v41, %s1516_s19 }
 0x285   : > { %v904_v54 = vpop.permute.xlu0 %903  ;;  %v928_v7 = vpop.permute.xlu1 %927 }
 0x286   : > { %922 = vst.msk [vmem:[%s1647_s28 + $0x5a] sm:$0x1] %vm507_vm11, %v904_v54  ;;  %v765_v10 = vpop.permute.xlu2 %764 }
 0x287   : > { %950 = vst.msk [vmem:[%s1647_s28 + $0x1b] sm:$0x1] %vm507_vm11, %v928_v7 }
 0x28b   : > { %1069 = vrot.lane.b32.xlu1 %v1046_v42, %s1516_s19  ;;  %1067 = vrot.lane.b32.xlu0 %v1045_v43, %s1516_s19 }
 0x28c   : > { %1065 = vrot.lane.b32.xlu2 %v1044_v44, %s1516_s19 }
 0x28d   : > { %v932_v48 = vpop.permute.xlu0 %931  ;;  %v934_v49 = vpop.permute.xlu1 %933 }
 0x28e   : > { %952 = vst.msk [vmem:[%s1647_s28 + $0x3b] sm:$0x1] %vm507_vm11, %v932_v48  ;;  %v771_v0 = vpop.permute.xlu2 %770 }
 0x28f   : > { %953 = vst.msk [vmem:[%s1647_s28 + $0x4b] sm:$0x1] %vm507_vm11, %v934_v49 }
 0x293   : > { %1075 = vrot.lane.b32.xlu1 %v1049_v2, %s1516_s19  ;;  %1073 = vrot.lane.b32.xlu0 %v1048_v52, %s1516_s19 }
 0x294   : > { %1071 = vrot.lane.b32.xlu2 %v1047_v51, %s1516_s19 }
 0x295   : > { %v763_v12 = vpop.permute.xlu1 %762  ;;  %v761_v55 = vpop.permute.xlu0 %760 }
 0x296   : > { %v792_v56 = vsel %vm790_vm4, %v763_v12, %v765_v10  ;;  %v791_v57 = vsel %vm790_vm4, %v759_v39, %v761_v55  ;;  %v777_v58 = vpop.permute.xlu2 %776 }
 0x297   : > { %808 = vst.msk [vmem:[%s1647_s28 + $0x17] sm:$0x1] %vm507_vm11, %v792_v56 }
 0x298   : > { %807 = vst.msk [vmem:[%s1647_s28 + $0x7] sm:$0x1] %vm507_vm11, %v791_v57 }
 0x29b   : > { %1081 = vrot.lane.b32.xlu1 %v1052_v3, %s1516_s19  ;;  %1079 = vrot.lane.b32.xlu0 %v1051_v59, %s1516_s19 }
 0x29c   : > { %1077 = vrot.lane.b32.xlu2 %v1050_v8, %s1516_s19 }
 0x29d   : > { %v769_v14 = vpop.permute.xlu1 %768  ;;  %v767_v16 = vpop.permute.xlu0 %766 }
 0x29e   : > { %v793_v18 = vsel %vm790_vm4, %v767_v16, %v769_v14  ;;  %v783_v19 = vpop.permute.xlu2 %782 }
 0x29f   : > { %809 = vst.msk [vmem:[%s1647_s28 + $0x27] sm:$0x1] %vm507_vm11, %v793_v18 }
 0x2a3   : > { %1126 = vrot.lane.b32.xlu1 %v1118_v4, %s1517_s21  ;;  %1085 = vrot.lane.b32.xlu0 %v1054_v5, %s1516_s19 }
 0x2a4   : > { %1083 = vrot.lane.b32.xlu2 %v1053_v20, %s1516_s19 }
 0x2a5   : > { %v775_v21 = vpop.permute.xlu1 %774  ;;  %v773_v15 = vpop.permute.xlu0 %772 }
 0x2a6   : > { %v795_v24 = vsel %vm790_vm4, %v775_v21, %v777_v58  ;;  %v794_v25 = vsel %vm790_vm4, %v771_v0, %v773_v15  ;;  %v789_v26 = vpop.permute.xlu2 %788 }
 0x2a7   : > { %811 = vst.msk [vmem:[%s1647_s28 + $0x47] sm:$0x1] %vm507_vm11, %v795_v24 }
 0x2a8   : > { %810 = vst.msk [vmem:[%s1647_s28 + $0x37] sm:$0x1] %vm507_vm11, %v794_v25 }
 0x2ab   : > { %1132 = vrot.lane.b32.xlu1 %v1121_v28, %s1517_s21  ;;  %1130 = vrot.lane.b32.xlu0 %v1120_v29, %s1517_s21 }
 0x2ac   : > { %1128 = vrot.lane.b32.xlu2 %v1119_v30, %s1517_s21 }
 0x2ad   : > { %v781_v31 = vpop.permute.xlu1 %780  ;;  %v779_v32 = vpop.permute.xlu0 %778 }
 0x2ae   : > { %v796_v60 = vsel %vm790_vm4, %v779_v32, %v781_v31  ;;  %v958_v34 = vpop.permute.xlu2 %957 }
 0x2af   : > { %812 = vst.msk [vmem:[%s1647_s28 + $0x57] sm:$0x1] %vm507_vm11, %v796_v60 }
 0x2b0   : > { %981 = vst.msk [vmem:[%s1647_s28 + $0xc] sm:$0x1] %vm507_vm11, %v958_v34 }
 0x2b3   : > { %1138 = vrot.lane.b32.xlu1 %v1124_v37, %s1517_s21  ;;  %1136 = vrot.lane.b32.xlu0 %v1123_v45, %s1517_s21 }
 0x2b4   : > { %1134 = vrot.lane.b32.xlu2 %v1122_v35, %s1517_s21 }
 0x2b5   : > { %v787_v53 = vpop.permute.xlu1 %786  ;;  %v785_v46 = vpop.permute.xlu0 %784 }
 0x2b6   : > { %v798_v61 = vsel %vm790_vm4, %v787_v53, %v789_v26  ;;  %v797_v47 = vsel %vm790_vm4, %v783_v19, %v785_v46  ;;  %v964_v36 = vpop.permute.xlu2 %963 }
 0x2b7   : > { %814 = vst.msk [vmem:[%s1647_s28 + $0x77] sm:$0x1] %vm507_vm11, %v798_v61 }
 0x2b8   : > { %813 = vst.msk [vmem:[%s1647_s28 + $0x67] sm:$0x1] %vm507_vm11, %v797_v47 }
 0x2b9   : > { %984 = vst.msk [vmem:[%s1647_s28 + $0x3c] sm:$0x1] %vm507_vm11, %v964_v36 }
 0x2bc   : > { %1140 = vrot.lane.b32.xlu2 %v1125_v62, %s1517_s21 }
 0x2bd   : > { %v940_v39 = vpop.permute.xlu1 %939  ;;  %v938_v6 = vpop.permute.xlu0 %937 }
 0x2be   : > { %956 = vst.msk [vmem:[%s1647_s28 + $0x7b] sm:$0x1] %vm507_vm11, %v940_v39  ;;  %v970_v40 = vpop.permute.xlu2 %969 }
 0x2bf   : > { %955 = vst.msk [vmem:[%s1647_s28 + $0x6b] sm:$0x1] %vm507_vm11, %v938_v6 }
 0x2c0   : > { %987 = vst.msk [vmem:[%s1647_s28 + $0x6c] sm:$0x1] %vm507_vm11, %v970_v40 }
 0x2c5   : > { %v962_v41 = vpop.permute.xlu1 %961  ;;  %v960_v54 = vpop.permute.xlu0 %959 }
 0x2c6   : > { %983 = vst.msk [vmem:[%s1647_s28 + $0x2c] sm:$0x1] %vm507_vm11, %v962_v41  ;;  %v992_v1 = vpop.permute.xlu2 %991 }
 0x2c7   : > { %982 = vst.msk [vmem:[%s1647_s28 + $0x1c] sm:$0x1] %vm507_vm11, %v960_v54 }
 0x2c8   : > { %1014 = vst.msk [vmem:[%s1647_s28 + $0x1d] sm:$0x1] %vm507_vm11, %v992_v1 }
 0x2cd   : > { %v968_v7 = vpop.permute.xlu1 %967  ;;  %v966_v63 = vpop.permute.xlu0 %965 }
 0x2ce   : > { %986 = vst.msk [vmem:[%s1647_s28 + $0x5c] sm:$0x1] %vm507_vm11, %v968_v7  ;;  %v998_v10 = vpop.permute.xlu2 %997 }
 0x2cf   : > { %985 = vst.msk [vmem:[%s1647_s28 + $0x4c] sm:$0x1] %vm507_vm11, %v966_v63 }
 0x2d0   : > { %1017 = vst.msk [vmem:[%s1647_s28 + $0x4d] sm:$0x1] %vm507_vm11, %v998_v10 }
 0x2d5   : > { %v990_v42 = vpop.permute.xlu1 %989  ;;  %v972_v43 = vpop.permute.xlu0 %971 }
 0x2d6   : > { %1013 = vst.msk [vmem:[%s1647_s28 + $0xd] sm:$0x1] %vm507_vm11, %v990_v42  ;;  %v1004_v44 = vpop.permute.xlu2 %1003 }
 0x2d7   : > { %988 = vst.msk [vmem:[%s1647_s28 + $0x7c] sm:$0x1] %vm507_vm11, %v972_v43 }
 0x2d8   : > { %1020 = vst.msk [vmem:[%s1647_s28 + $0x7d] sm:$0x1] %vm507_vm11, %v1004_v44 }
 0x2dd   : > { %v996_v48 = vpop.permute.xlu1 %995  ;;  %v994_v49 = vpop.permute.xlu0 %993 }
 0x2de   : > { %1016 = vst.msk [vmem:[%s1647_s28 + $0x3d] sm:$0x1] %vm507_vm11, %v996_v48  ;;  %v1060_v50 = vpop.permute.xlu2 %1059 }
 0x2df   : > { %1015 = vst.msk [vmem:[%s1647_s28 + $0x2d] sm:$0x1] %vm507_vm11, %v994_v49 }
 0x2e5   : > { %v1002_v11 = vpop.permute.xlu1 %1001  ;;  %v1000_v0 = vpop.permute.xlu0 %999 }
 0x2e6   : > { %1019 = vst.msk [vmem:[%s1647_s28 + $0x6d] sm:$0x1] %vm507_vm11, %v1002_v11  ;;  %v1066_v2 = vpop.permute.xlu2 %1065 }
 0x2e7   : > { %1018 = vst.msk [vmem:[%s1647_s28 + $0x5d] sm:$0x1] %vm507_vm11, %v1000_v0 }
 0x2ed   : > { %v1058_v52 = vpop.permute.xlu1 %1057  ;;  %v1056_v51 = vpop.permute.xlu0 %1055 }
 0x2ee   : > { %v1088_v12 = vsel %vm1087_vm5, %v1056_v51, %v1058_v52  ;;  %v1072_v55 = vpop.permute.xlu2 %1071 }
 0x2ef   : > { %1104 = vst.msk [vmem:[%s1647_s28 + $0xe] sm:$0x1] %vm507_vm11, %v1088_v12 }
 0x2f5   : > { %v1064_v13 = vpop.permute.xlu1 %1063  ;;  %v1062_v56 = vpop.permute.xlu0 %1061 }
 0x2f6   : > { %v1090_v57 = vsel %vm1087_vm5, %v1064_v13, %v1066_v2  ;;  %v1089_v58 = vsel %vm1087_vm5, %v1060_v50, %v1062_v56  ;;  %v1078_v3 = vpop.permute.xlu2 %1077 }
 0x2f7   : > { %1106 = vst.msk [vmem:[%s1647_s28 + $0x2e] sm:$0x1] %vm507_vm11, %v1090_v57 }
 0x2f8   : > { %1105 = vst.msk [vmem:[%s1647_s28 + $0x1e] sm:$0x1] %vm507_vm11, %v1089_v58 }
 0x2fd   : > { %v1070_v59 = vpop.permute.xlu1 %1069  ;;  %v1068_v8 = vpop.permute.xlu0 %1067 }
 0x2fe   : > { %v1091_v14 = vsel %vm1087_vm5, %v1068_v8, %v1070_v59  ;;  %v1084_v16 = vpop.permute.xlu2 %1083 }
 0x2ff   : > { %1107 = vst.msk [vmem:[%s1647_s28 + $0x3e] sm:$0x1] %vm507_vm11, %v1091_v14 }
 0x305   : > { %v1076_v17 = vpop.permute.xlu1 %1075  ;;  %v1074_v18 = vpop.permute.xlu0 %1073 }
 0x306   : > { %v1093_v19 = vsel %vm1087_vm5, %v1076_v17, %v1078_v3  ;;  %v1092_v4 = vsel %vm1087_vm5, %v1072_v55, %v1074_v18  ;;  %v1129_v5 = vpop.permute.xlu2 %1128 }
 0x307   : > { %1109 = vst.msk [vmem:[%s1647_s28 + $0x5e] sm:$0x1] %vm507_vm11, %v1093_v19 }
 0x308   : > { %1108 = vst.msk [vmem:[%s1647_s28 + $0x4e] sm:$0x1] %vm507_vm11, %v1092_v4 }
 0x309   : > { %1151 = vst.msk [vmem:[%s1647_s28 + $0x1f] sm:$0x1] %vm507_vm11, %v1129_v5 }
 0x30d   : > { %v1082_v20 = vpop.permute.xlu1 %1081  ;;  %v1080_v21 = vpop.permute.xlu0 %1079 }
 0x30e   : > { %v1094_v15 = vsel %vm1087_vm5, %v1080_v21, %v1082_v20  ;;  %v1135_v22 = vpop.permute.xlu2 %1134 }
 0x30f   : > { %1110 = vst.msk [vmem:[%s1647_s28 + $0x6e] sm:$0x1] %vm507_vm11, %v1094_v15 }
 0x310   : > { %1154 = vst.msk [vmem:[%s1647_s28 + $0x4f] sm:$0x1] %vm507_vm11, %v1135_v22 }
 0x315   : > { %v1127_v23 = vpop.permute.xlu1 %1126  ;;  %v1086_v24 = vpop.permute.xlu0 %1085 }
 0x316   : > { %1150 = vst.msk [vmem:[%s1647_s28 + $0xf] sm:$0x1] %vm507_vm11, %v1127_v23  ;;  %v1095_v25 = vsel %vm1087_vm5, %v1084_v16, %v1086_v24  ;;  %v1141_v26 = vpop.permute.xlu2 %1140 }
 0x317   : > { %1111 = vst.msk [vmem:[%s1647_s28 + $0x7e] sm:$0x1] %vm507_vm11, %v1095_v25 }
 0x318   : > { %1157 = vst.msk [vmem:[%s1647_s28 + $0x7f] sm:$0x1] %vm507_vm11, %v1141_v26 }
 0x31d   : > { %v1133_v27 = vpop.permute.xlu1 %1132  ;;  %v1131_v28 = vpop.permute.xlu0 %1130 }
 0x31e   : > { %1153 = vst.msk [vmem:[%s1647_s28 + $0x3f] sm:$0x1] %vm507_vm11, %v1133_v27 }
 0x31f   : > { %1152 = vst.msk [vmem:[%s1647_s28 + $0x2f] sm:$0x1] %vm507_vm11, %v1131_v28 }
 0x325   : > { %v1139_v29 = vpop.permute.xlu1 %1138  ;;  %v1137_v30 = vpop.permute.xlu0 %1136 }
 0x326   : > { %1156 = vst.msk [vmem:[%s1647_s28 + $0x6f] sm:$0x1] %vm507_vm11, %v1139_v29 }
 0x327   : > { %1155 = vst.msk [vmem:[%s1647_s28 + $0x5f] sm:$0x1] %vm507_vm11, %v1137_v30 }
 0x328   : > { %1443 = shalt.err (!%p1440_p5)
}
 0x329   : > { %s1518_s26 = smov 128   ;;  %s1519_s28 = smov 8  }
 0x32a   : > { %1335 = dma.vmem_to_hbm [thread:$0]  (%p1580_p4), %s1174_s4, 2048, %s1176_s5, %s1159_s15, %s1518_s26, %s1518_s26, %s1519_s28  }
 0x32b PF: > { %p1341_p6 = scmp.ge.s32.totalorder %s1494_s17, 2  ;;  %s1190_s19 = sand.u32 1, %s1474_s12  }
 0x32c   : > { %s1191_s21 = scalar_lea.sflag [#allocation4], %s1190_s19 }
 0x32d   : > { %p1338_p7 = pnand %p1341_p6, %p1587_p8 }
 0x32f   : > { %p1339_p9 = pneg %p1338_p7 }
 0x331   : > { %1469 = dma.done.wait (%p1339_p9), %s1191_s21, 2048  }
 0x332   : > { %1471 = vsyncadd (%p1339_p9), %s1191_s21, 4294965248  ;;  %s16_s17 = sadd.s32 1, %s1494_s17   ;;  %s2327_s12 = smov %s1478_s13 }
 0x333   : > { %p13_p10 = scmp.ge.s32.totalorder %s16_s17, 4   ;;  %s2328_s13 = smov %s1482_s14 }
 0x334   : > { %s2329_s14 = smov %s1593_s25  ;;  %s2330_s15 = smov %s1490_s16 }
 0x335   : > { %s2331_s16 = smov %s2333_s20  ;;  %15 = sbr.rel (!%p13_p10) target bundleno = 4 (0x4), region = 67 }
 0x33a   :  { %1197 = vsyncpa [#allocation4], 1 }
 0x33b   :  { %1199 = vsyncpa [#allocation4 + $0x1], 1 }

</bundles_post_ra>
